<compile_context>
chip_gen: v6e
topology: v6e:2x2x1
jax: 0.10.0
libtpu: 0.0.40
codegen_flags: <defaults>
</compile_context>

<pallas_src>
import jax
import jax.numpy as jnp
from jax.experimental import pallas as pl
from jax.experimental.pallas import tpu as pltpu

# Model dims (fixed by the PyTorch module: Conv2d(1,20,5) + Linear(8*8*20,64)
# force 28x28 single-channel inputs).
H_IN, W_IN = 28, 28
K = 5                                   # conv kernel size
C_OUT = 20                              # conv out channels
H_C, W_C = H_IN - K + 1, W_IN - K + 1   # 24, 24
POOL = 3
H_P, W_P = H_C // POOL, W_C // POOL     # 8, 8
FEAT = C_OUT * H_P * W_P                # 1280
HID = 64
NCLS = 10
NCLS_PAD = 128                          # lane-dense output
KROWS = K * W_IN                        # 140: contraction axis (di, w_in)
NLANE = C_OUT * W_P                     # 160: conv/pool lane axis (c, w_out)
ROWS_PER_B = POOL * H_P                 # 24 im2col rows per sample (i, h_out)


def _round_up(x, m):
    return (x + m - 1) // m * m


def cnn_kernel(lhs_ref, k_ref, cb_ref, w1_ref, b1_ref, w2_ref, b2_ref, out_ref):
    # lhs_ref: (TB*24, 140) bf16  host im2col rows (b, i, h_out), cols (di, w_in)
    # k_ref  : (140, 480)   bf16  fused conv RHS, one 160-lane group per W offset
    # cb_ref : (1, 160)     f32   conv bias broadcast over (c, w_out) lanes
    # w1_ref : (1280, 64)   bf16  fc1 weight, rows permuted to (h_out, c, w_out)
    # b1_ref : (1, 64)      f32
    # w2_ref : (64, 128)    f32   fc2 weight, classes padded 10 -> 128
    # b2_ref : (1, 128)     f32   padded classes biased to -1e30
    # out_ref: (TB, 128)    f32
    tb = out_ref.shape[0]

    # ---- conv on the MXU: single bf16 matmul against the fused 480-lane RHS ----
    y = jnp.dot(lhs_ref[...], k_ref[...], preferred_element_type=jnp.float32)
    # y: (TB*24, 480); the three 160-lane column groups are the 3 W offsets of
    # each pool window -> W-pool is an elementwise max of the groups.
    y = jnp.maximum(jnp.maximum(y[:, :NLANE], y[:, NLANE:2 * NLANE]),
                    y[:, 2 * NLANE:])

    # ---- H-pool: rows are (b, i, h_out) with pool offset i major -> free max ----
    y = y.reshape(tb, POOL, H_P, NLANE)
    pooled = jnp.max(y, axis=1)                               # (TB, 8, 160)
    # bias + ReLU commute with the window max (same channel within a window).
    pooled = jnp.maximum(pooled + cb_ref[...], 0.0)

    # ---- fc1 + ReLU (bf16 operands, f32 accumulation; w1 rows pre-permuted) ----
    feat = pooled.astype(jnp.bfloat16).reshape(tb, FEAT)      # (TB, 1280)
    h1 = jnp.dot(feat, w1_ref[...], preferred_element_type=jnp.float32) + b1_ref[...]
    h1 = jnp.maximum(h1, 0.0)

    # ---- fc2 (tiny; kept f32, lane-dense 128-class output) ----
    logits = jnp.dot(h1, w2_ref[...], preferred_element_type=jnp.float32) + b2_ref[...]

    # ---- log_softmax over class lanes (padded lanes hold -1e30 -> exp == 0) ----
    m = jnp.max(logits, axis=-1, keepdims=True)
    lse = m + jnp.log(jnp.sum(jnp.exp(logits - m), axis=-1, keepdims=True))
    out_ref[...] = logits - lse


def _prep_params(params):
    """One-time host-side layout plumbing (weights in PyTorch layouts in)."""
    conv_w, conv_b, fc1_w, fc1_b, fc2_w, fc2_b = [
        jnp.asarray(p, jnp.float32) for p in params]

    # Conv -> fused (140, 480) matmul RHS; column group j (a W-pool offset) holds
    #   Kcat[di*28 + w_in, j*160 + c*8 + w_out] = conv_w[c, 0, di, w_in - (3*w_out + j)]
    w = conv_w[:, 0, :, :]                                   # (20, 5, 5) [c, di, dj]
    j_i = jnp.arange(POOL)[:, None, None, None, None]
    di_i = jnp.arange(K)[None, :, None, None, None]
    win = jnp.arange(W_IN)[None, None, :, None, None]
    c_i = jnp.arange(C_OUT)[None, None, None, :, None]
    wo = jnp.arange(W_P)[None, None, None, None, :]
    dj = win - POOL * wo - j_i
    valid = (dj >= 0) & (dj < K)
    kmat = jnp.where(valid, w[c_i, di_i, jnp.clip(dj, 0, K - 1)], 0.0)
    kmat = kmat.reshape(POOL, KROWS, NLANE)                  # (3, 140, 160)
    kcat = jnp.transpose(kmat, (1, 0, 2)).reshape(KROWS, POOL * NLANE)
    kcat = kcat.astype(jnp.bfloat16)                         # (140, 480)

    cb = jnp.repeat(conv_b, W_P).reshape(1, NLANE)           # lane index c*8 + w_out

    # fc1: PyTorch flatten order is (c, h, w); kernel flatten order is (h, c, w).
    w1 = (fc1_w.reshape(HID, C_OUT, H_P, W_P).transpose(2, 1, 3, 0)
          .reshape(FEAT, HID).astype(jnp.bfloat16))
    b1 = fc1_b.reshape(1, HID)

    # fc2: pad classes to 128 lanes; padded biases -1e30 drop out of log_softmax.
    w2 = jnp.zeros((HID, NCLS_PAD), jnp.float32).at[:, :NCLS].set(fc2_w.T)
    b2 = jnp.full((1, NCLS_PAD), -1e30, jnp.float32).at[0, :NCLS].set(fc2_b)
    return kcat, cb, w1, b1, w2, b2


def cnn_forward(x_nchw, params, *, block_b=256):
    """x_nchw: (B, 1, 28, 28) float. params in PyTorch layouts. Returns (B, 10)."""
    kcat, cb, w1, b1, w2, b2 = _prep_params(params)

    x = jnp.asarray(x_nchw, jnp.float32).reshape(-1, H_IN, W_IN)
    B = x.shape[0]
    b8 = _round_up(B, 8)
    # Batch block: multiple of 8, capped at block_b, and split into >= 2 grid
    # steps whenever the padded batch allows it (keeps both v7x TensorCores busy
    # under dimension_semantics=("parallel",)).  block_b=256 also respects the
    # v7x 64 MiB/TC VMEM budget; v5e/v6e can raise it for very large batches.
    tb = min(block_b, max(8, _round_up(b8 // 2, 8)))
    b_pad = _round_up(B, tb)
    grid = (b_pad // tb,)

    # Host-side im2col (layout plumbing): lane-dense bf16 LHS rows so the kernel
    # is pure MXU + maxes with no in-kernel slicing/concat/relayout.
    #   lhs[b*24 + i*8 + ho, di*28 + w] = x[b, 3*ho + i + di, w]   (max row 27)
    xp = jnp.pad(x, ((0, b_pad - B), (0, 0), (0, 0)))
    hsel = (POOL * jnp.arange(H_P)[None, :, None]
            + jnp.arange(POOL)[:, None, None]
            + jnp.arange(K)[None, None, :])                  # (3, 8, 5)
    lhs = xp[:, hsel, :].reshape(b_pad * ROWS_PER_B, KROWS).astype(jnp.bfloat16)

    flops = b_pad * (2 * ROWS_PER_B * KROWS * POOL * NLANE
                     + 2 * FEAT * HID + 2 * HID * NCLS_PAD)
    bytes_accessed = (2 * lhs.size + 2 * (kcat.size + w1.size)
                      + 4 * (b_pad * NCLS_PAD + cb.size + b1.size
                             + w2.size + b2.size))

    # VMEM budget: ~160 KiB/sample of block-local intermediates + double-buffered
    # input, plus headroom for resident weights / output / compiler scratch.
    vmem_limit = min(100 * 1024 * 1024, tb * 160 * 1024 + 12 * 1024 * 1024)

    out = pl.pallas_call(
        cnn_kernel,
        out_shape=jax.ShapeDtypeStruct((b_pad, NCLS_PAD), jnp.float32),
        grid=grid,
        in_specs=[
            # streamed, double-buffered, lane-dense input block (full 140-col rows)
            pl.BlockSpec((tb * ROWS_PER_B, KROWS), lambda b: (b, 0)),
            # resident weights (constant index maps)
            pl.BlockSpec((KROWS, POOL * NLANE), lambda b: (0, 0)),
            pl.BlockSpec((1, NLANE), lambda b: (0, 0)),
            pl.BlockSpec((FEAT, HID), lambda b: (0, 0)),
            pl.BlockSpec((1, HID), lambda b: (0, 0)),
            pl.BlockSpec((HID, NCLS_PAD), lambda b: (0, 0)),
            pl.BlockSpec((1, NCLS_PAD), lambda b: (0, 0)),
        ],
        out_specs=pl.BlockSpec((tb, NCLS_PAD), lambda b: (b, 0)),
        compiler_params=pltpu.CompilerParams(
            dimension_semantics=("parallel",),
            vmem_limit_bytes=int(vmem_limit),
        ),
        cost_estimate=pl.CostEstimate(
            flops=int(flops),
            transcendentals=int(b_pad * (NCLS_PAD + 1)),
            bytes_accessed=int(bytes_accessed)),
    )(lhs, kcat, cb, w1, b1, w2, b2)
    return out[:B, :NCLS]


def ref_forward(x_nchw, params):
    """Pure-JAX f32 reference mirroring the PyTorch module exactly."""
    conv_w, conv_b, fc1_w, fc1_b, fc2_w, fc2_b = params
    hp = jax.lax.Precision.HIGHEST
    y = jax.lax.conv_general_dilated(
        x_nchw, conv_w, window_strides=(1, 1), padding="VALID",
        dimension_numbers=("NCHW", "OIHW", "NCHW"), precision=hp)
    y = y + conv_b[None, :, None, None]
    y = jnp.maximum(y, 0.0)
    y = jax.lax.reduce_window(y, -jnp.inf, jax.lax.max,
                              (1, 1, POOL, POOL), (1, 1, POOL, POOL), "VALID")
    y = y.reshape(y.shape[0], FEAT)                          # NCHW flatten (c, h, w)
    y = jnp.maximum(jnp.dot(y, fc1_w.T, precision=hp) + fc1_b, 0.0)
    logits = jnp.dot(y, fc2_w.T, precision=hp) + fc2_b
    return jax.nn.log_softmax(logits, axis=-1)


if __name__ == "__main__":
    key = jax.random.PRNGKey(0)
    ks = jax.random.split(key, 7)

    def uinit(k, shape, fan_in):
        bound = 1.0 / float(fan_in) ** 0.5
        return jax.random.uniform(k, shape, jnp.float32, -bound, bound)

    # Deterministic synthetic parameters with the module's shapes.
    conv_w = uinit(ks[0], (C_OUT, 1, K, K), 1 * K * K)       # nn.Conv2d(1, 20, 5)
    conv_b = uinit(ks[1], (C_OUT,), 1 * K * K)
    fc1_w = uinit(ks[2], (HID, FEAT), FEAT)                  # nn.Linear(1280, 64)
    fc1_b = uinit(ks[3], (HID,), FEAT)
    fc2_w = uinit(ks[4], (NCLS, HID), HID)                   # nn.Linear(64, 10)
    fc2_b = uinit(ks[5], (NCLS,), HID)
    params = (conv_w, conv_b, fc1_w, fc1_b, fc2_w, fc2_b)

    x = jax.random.normal(ks[6], (2, 1, H_IN, W_IN), jnp.float32)

    out = jax.block_until_ready(cnn_forward(x, params))
    assert out.shape == (2, NCLS) and out.dtype == jnp.float32

    ref = jax.block_until_ready(ref_forward(x, params))
    max_err = float(jnp.max(jnp.abs(out - ref)))
    # bf16 matmul operands (f32 accumulation) -> tolerance loosened per review.
    assert max_err < 2e-2, f"mismatch vs reference: max abs err {max_err}"

    print("KERNEL_OK")
</pallas_src>

<mosaic_0001>
module attributes {stable_mosaic.version = 11 : i64} {
  func.func @cnn_kernel(%arg0: i32, %arg1: memref<192x140xbf16, #tpu.memory_space<vmem>>, %arg2: memref<140x480xbf16, #tpu.memory_space<vmem>>, %arg3: memref<1x160xf32, #tpu.memory_space<vmem>>, %arg4: memref<1280x64xbf16, #tpu.memory_space<vmem>>, %arg5: memref<1x64xf32, #tpu.memory_space<vmem>>, %arg6: memref<64x128xf32, #tpu.memory_space<vmem>>, %arg7: memref<1x128xf32, #tpu.memory_space<vmem>>, %arg8: memref<8x128xf32, #tpu.memory_space<vmem>>) attributes {dimension_semantics = [#tpu.dimension_semantics<parallel>], iteration_bounds = array<i64: 1>, scalar_prefetch = 0 : i64, scratch_operands = 0 : i64, tpu.core_type = #tpu.core_type<tc>, window_params = [{transform_indices = @transform_0, window_bounds = array<i64: 192, 140>}, {pipeline_mode = #tpu.pipeline_mode<synchronous>, transform_indices = @transform_1, window_bounds = array<i64: 140, 480>}, {pipeline_mode = #tpu.pipeline_mode<synchronous>, transform_indices = @transform_2, window_bounds = array<i64: 1, 160>}, {pipeline_mode = #tpu.pipeline_mode<synchronous>, transform_indices = @transform_3, window_bounds = array<i64: 1280, 64>}, {pipeline_mode = #tpu.pipeline_mode<synchronous>, transform_indices = @transform_4, window_bounds = array<i64: 1, 64>}, {pipeline_mode = #tpu.pipeline_mode<synchronous>, transform_indices = @transform_5, window_bounds = array<i64: 64, 128>}, {pipeline_mode = #tpu.pipeline_mode<synchronous>, transform_indices = @transform_6, window_bounds = array<i64: 1, 128>}, {transform_indices = @transform_7, window_bounds = array<i64: 8, 128>}]} {
    %c0 = arith.constant 0 : index
    %c0_0 = arith.constant 0 : index
    %0 = vector.load %arg1[%c0, %c0_0] : memref<192x140xbf16, #tpu.memory_space<vmem>>, vector<192x140xbf16>
    %c0_1 = arith.constant 0 : index
    %c0_2 = arith.constant 0 : index
    %1 = vector.load %arg2[%c0_1, %c0_2] : memref<140x480xbf16, #tpu.memory_space<vmem>>, vector<140x480xbf16>
    %cst = arith.constant dense<0.000000e+00> : vector<192x480xf32>
    %2 = tpu.matmul %0, %1, %cst {dimension_numbers = #tpu.dot_dimension_numbers<[1], [0], [0], [1], [0, 0, 1, 1], [], []>} : vector<192x140xbf16>, vector<140x480xbf16>, vector<192x480xf32> -> vector<192x480xf32>
    %3 = vector.extract_strided_slice %2 {offsets = [0, 0], sizes = [192, 160], strides = [1, 1]} : vector<192x480xf32> to vector<192x160xf32>
    %4 = vector.extract_strided_slice %2 {offsets = [0, 160], sizes = [192, 160], strides = [1, 1]} : vector<192x480xf32> to vector<192x160xf32>
    %5 = arith.maximumf %3, %4 : vector<192x160xf32>
    %6 = vector.extract_strided_slice %2 {offsets = [0, 320], sizes = [192, 160], strides = [1, 1]} : vector<192x480xf32> to vector<192x160xf32>
    %7 = arith.maximumf %5, %6 : vector<192x160xf32>
    %8 = vector.shape_cast %7 : vector<192x160xf32> to vector<8x3x8x160xf32>
    %cst_3 = arith.constant dense<0xFF800000> : vector<8x8x160xf32>
    %9 = vector.multi_reduction <maximumf>, %8, %cst_3 [1] : vector<8x3x8x160xf32> to vector<8x8x160xf32>
    %c0_4 = arith.constant 0 : index
    %c0_5 = arith.constant 0 : index
    %10 = vector.load %arg3[%c0_4, %c0_5] : memref<1x160xf32, #tpu.memory_space<vmem>>, vector<1x160xf32>
    %11 = vector.shape_cast %10 : vector<1x160xf32> to vector<1x1x160xf32>
    %12 = vector.broadcast %11 : vector<1x1x160xf32> to vector<8x8x160xf32>
    %13 = arith.addf %9, %12 : vector<8x8x160xf32>
    %cst_6 = arith.constant 0.000000e+00 : f32
    %14 = vector.broadcast %cst_6 : f32 to vector<8x8x160xf32>
    %15 = arith.maximumf %13, %14 : vector<8x8x160xf32>
    %16 = arith.truncf %15 : vector<8x8x160xf32> to vector<8x8x160xbf16>
    %17 = vector.shape_cast %16 : vector<8x8x160xbf16> to vector<8x1280xbf16>
    %c0_7 = arith.constant 0 : index
    %c0_8 = arith.constant 0 : index
    %18 = vector.load %arg4[%c0_7, %c0_8] : memref<1280x64xbf16, #tpu.memory_space<vmem>>, vector<1280x64xbf16>
    %cst_9 = arith.constant dense<0.000000e+00> : vector<8x64xf32>
    %19 = tpu.matmul %17, %18, %cst_9 {dimension_numbers = #tpu.dot_dimension_numbers<[1], [0], [0], [1], [0, 0, 1, 1], [], []>} : vector<8x1280xbf16>, vector<1280x64xbf16>, vector<8x64xf32> -> vector<8x64xf32>
    %c0_10 = arith.constant 0 : index
    %c0_11 = arith.constant 0 : index
    %20 = vector.load %arg5[%c0_10, %c0_11] : memref<1x64xf32, #tpu.memory_space<vmem>>, vector<1x64xf32>
    %21 = vector.broadcast %20 : vector<1x64xf32> to vector<8x64xf32>
    %22 = arith.addf %19, %21 : vector<8x64xf32>
    %cst_12 = arith.constant 0.000000e+00 : f32
    %23 = vector.broadcast %cst_12 : f32 to vector<8x64xf32>
    %24 = arith.maximumf %22, %23 : vector<8x64xf32>
    %c0_13 = arith.constant 0 : index
    %c0_14 = arith.constant 0 : index
    %25 = vector.load %arg6[%c0_13, %c0_14] : memref<64x128xf32, #tpu.memory_space<vmem>>, vector<64x128xf32>
    %cst_15 = arith.constant dense<0.000000e+00> : vector<8x128xf32>
    %26 = tpu.matmul %24, %25, %cst_15 {dimension_numbers = #tpu.dot_dimension_numbers<[1], [0], [0], [1], [0, 0, 1, 1], [], []>} : vector<8x64xf32>, vector<64x128xf32>, vector<8x128xf32> -> vector<8x128xf32>
    %c0_16 = arith.constant 0 : index
    %c0_17 = arith.constant 0 : index
    %27 = vector.load %arg7[%c0_16, %c0_17] : memref<1x128xf32, #tpu.memory_space<vmem>>, vector<1x128xf32>
    %28 = vector.broadcast %27 : vector<1x128xf32> to vector<8x128xf32>
    %29 = arith.addf %26, %28 : vector<8x128xf32>
    %cst_18 = arith.constant dense<0xFF800000> : vector<8xf32>
    %30 = vector.multi_reduction <maximumf>, %29, %cst_18 [1] : vector<8x128xf32> to vector<8xf32>
    %31 = vector.shape_cast %30 : vector<8xf32> to vector<8x1xf32>
    %32 = vector.broadcast %31 : vector<8x1xf32> to vector<8x128xf32>
    %33 = arith.subf %29, %32 : vector<8x128xf32>
    %34 = math.exp %33 : vector<8x128xf32>
    %cst_19 = arith.constant dense<0.000000e+00> : vector<8xf32>
    %35 = vector.multi_reduction <add>, %34, %cst_19 [1] : vector<8x128xf32> to vector<8xf32>
    %36 = vector.shape_cast %35 : vector<8xf32> to vector<8x1xf32>
    %37 = math.log %36 : vector<8x1xf32>
    %38 = arith.addf %31, %37 : vector<8x1xf32>
    %39 = vector.broadcast %38 : vector<8x1xf32> to vector<8x128xf32>
    %40 = arith.subf %29, %39 : vector<8x128xf32>
    %c0_20 = arith.constant 0 : index
    %c0_21 = arith.constant 0 : index
    %41 = vector.load %arg8[%c0_20, %c0_21] : memref<8x128xf32, #tpu.memory_space<vmem>>, vector<8x128xf32>
    tpu.vector_store %arg8[%c0_20, %c0_21], %40 {strides = array<i32>} : memref<8x128xf32, #tpu.memory_space<vmem>>, vector<8x128xf32>,
    return
  }
  func.func @transform_0(%arg0: i32) -> (i32, i32) {
    %c0_i32 = arith.constant 0 : i32
    %c0_i32_0 = arith.constant 0 : i32
    return %arg0, %c0_i32 : i32, i32
  }
  func.func @transform_1(%arg0: i32) -> (i32, i32) {
    %c0_i32 = arith.constant 0 : i32
    %c0_i32_0 = arith.constant 0 : i32
    %c0_i32_1 = arith.constant 0 : i32
    return %c0_i32, %c0_i32_0 : i32, i32
  }
  func.func @transform_2(%arg0: i32) -> (i32, i32) {
    %c0_i32 = arith.constant 0 : i32
    %c0_i32_0 = arith.constant 0 : i32
    %c0_i32_1 = arith.constant 0 : i32
    return %c0_i32, %c0_i32_0 : i32, i32
  }
  func.func @transform_3(%arg0: i32) -> (i32, i32) {
    %c0_i32 = arith.constant 0 : i32
    %c0_i32_0 = arith.constant 0 : i32
    %c0_i32_1 = arith.constant 0 : i32
    return %c0_i32, %c0_i32_0 : i32, i32
  }
  func.func @transform_4(%arg0: i32) -> (i32, i32) {
    %c0_i32 = arith.constant 0 : i32
    %c0_i32_0 = arith.constant 0 : i32
    %c0_i32_1 = arith.constant 0 : i32
    return %c0_i32, %c0_i32_0 : i32, i32
  }
  func.func @transform_5(%arg0: i32) -> (i32, i32) {
    %c0_i32 = arith.constant 0 : i32
    %c0_i32_0 = arith.constant 0 : i32
    %c0_i32_1 = arith.constant 0 : i32
    return %c0_i32, %c0_i32_0 : i32, i32
  }
  func.func @transform_6(%arg0: i32) -> (i32, i32) {
    %c0_i32 = arith.constant 0 : i32
    %c0_i32_0 = arith.constant 0 : i32
    %c0_i32_1 = arith.constant 0 : i32
    return %c0_i32, %c0_i32_0 : i32, i32
  }
  func.func @transform_7(%arg0: i32) -> (i32, i32) {
    %c0_i32 = arith.constant 0 : i32
    %c0_i32_0 = arith.constant 0 : i32
    return %arg0, %c0_i32 : i32, i32
  }
}

</mosaic_0001>

<bundles_post_ra>
// kernel: tpu_custom_call.1
= control target key start
LH: loop header
LB: loop body
LE: loop exit
PB: predicated region body
PF: predicated region fallthrough
CT: control target
= control target key end

     0   :  { %vm372_vm0 = vcmask 97280   ;;  %vm409_vm1 = vcmask 1045504   ;;  %s4204_s0 = inlined_call_operand.vmem [shape: bf16[192,140], index: 0, kind: input, shape index: {}]   ;;  %s4205_s1 = inlined_call_operand.vmem [shape: bf16[140,480], index: 1, kind: input, shape index: {}]   ;;  %s4206_s2 = inlined_call_operand.vmem [shape: f32[1,160], index: 2, kind: input, shape index: {}]   ;;  %s4207_s3 = inlined_call_operand.vmem [shape: bf16[1280,64], index: 3, kind: input, shape index: {}]   ;;  %s4208_s4 = inlined_call_operand.vmem [shape: f32[1,64], index: 4, kind: input, shape index: {}]   ;;  %s4209_s5 = inlined_call_operand.vmem [shape: f32[64,128], index: 5, kind: input, shape index: {}]   ;;  %s4210_s6 = inlined_call_operand.vmem [shape: f32[1,128], index: 6, kind: input, shape index: {}]   ;;  %s4211_s7 = inlined_call_operand.hbm [shape: f32[8,128], index: 7, kind: output, shape index: {}]  }
   0x1   :  { %v2969_v0 = vld [vmem:[%s4205_s1 + $0xe4] ss:$16 sps:$4 sm:$0xff]   ;;  %v2971_v1 = vld [vmem:[%s4205_s1 + $0xec] ss:$16 sps:$4 sm:$0xff]   ;;  %v2973_v2 = vld [vmem:[%s4205_s1 + $0xe0] ss:$16 sps:$4 sm:$0xff]  }
   0x2   :  { %422 = vmatprep.subr.bf16.mxu0 %v2969_v0  ;;  %v2974_v3 = vld [vmem:[%s4205_s1 + $0xe8] ss:$16 sps:$4 sm:$0xff]   ;;  %575 = vmatprep.subr.bf16.mxu1 %v2971_v1  ;;  %v2975_v4 = vld [vmem:[%s4205_s1 + $0xc4] ss:$16 sps:$4 sm:$0xff]   ;;  %v2977_v5 = vld [vmem:[%s4205_s1 + $0xcc] ss:$16 sps:$4 sm:$0xff]  }
   0x3   :  { %423 = vmatpush1.bf16.msra.mxu0 %v2973_v2  ;;  %576 = vmatpush1.bf16.msra.mxu1 %v2974_v3  ;;  %v2979_v6 = vld [vmem:[%s4205_s1 + $0xc0] ss:$16 sps:$4 sm:$0xff]   ;;  %v2980_v7 = vld [vmem:[%s4205_s1 + $0xc8] ss:$16 sps:$4 sm:$0xff]   ;;  %v2981_v8 = vld [vmem:[%s4205_s1 + $0xa4] ss:$16 sps:$4 sm:$0xff]  }
   0x4   :  { %424 = vmatprep.subr.bf16.mxu0 %v2975_v4  ;;  %577 = vmatprep.subr.bf16.mxu1 %v2977_v5  ;;  %v2983_v9 = vld [vmem:[%s4205_s1 + $0xac] ss:$16 sps:$4 sm:$0xff]   ;;  %v2985_v10 = vld [vmem:[%s4205_s1 + $0xa0] ss:$16 sps:$4 sm:$0xff]   ;;  %v2986_v11 = vld [vmem:[%s4205_s1 + $0xa8] ss:$16 sps:$4 sm:$0xff]  }
   0x5   :  { %v2987_v12 = vld [vmem:[%s4205_s1 + $0x84] ss:$16 sps:$4 sm:$0xff]   ;;  %v2989_v13 = vld [vmem:[%s4205_s1 + $0x8c] ss:$16 sps:$4 sm:$0xff]   ;;  %v2991_v14 = vld [vmem:[%s4205_s1 + $0x80] ss:$16 sps:$4 sm:$0xff]  }
   0x6   :  { %v2992_v15 = vld [vmem:[%s4205_s1 + $0x88] ss:$16 sps:$4 sm:$0xff]   ;;  %v2993_v16 = vld [vmem:[%s4205_s1 + $0x64] ss:$16 sps:$4 sm:$0xff]   ;;  %v2995_v17 = vld [vmem:[%s4205_s1 + $0x6c] ss:$16 sps:$4 sm:$0xff]  }
   0x7   :  { %425 = vmatpush1.bf16.msra.mxu0 %v2979_v6  ;;  %578 = vmatpush1.bf16.msra.mxu1 %v2980_v7  ;;  %v2997_v18 = vld [vmem:[%s4205_s1 + $0x60] ss:$16 sps:$4 sm:$0xff]   ;;  %v2998_v19 = vld [vmem:[%s4205_s1 + $0x68] ss:$16 sps:$4 sm:$0xff]   ;;  %v2999_v20 = vld [vmem:[%s4205_s1 + $0x44] ss:$16 sps:$4 sm:$0xff]  }
   0x8   :  { %426 = vmatprep.subr.bf16.mxu0 %v2981_v8  ;;  %579 = vmatprep.subr.bf16.mxu1 %v2983_v9  ;;  %v3001_v21 = vld [vmem:[%s4205_s1 + $0x4c] ss:$16 sps:$4 sm:$0xff]   ;;  %v3003_v22 = vld [vmem:[%s4205_s1 + $0x40] ss:$16 sps:$4 sm:$0xff]   ;;  %v3004_v23 = vld [vmem:[%s4205_s1 + $0x48] ss:$16 sps:$4 sm:$0xff]  }
   0x9   :  { %v3005_v24 = vld [vmem:[%s4205_s1 + $0x24] ss:$16 sps:$4 sm:$0xff]   ;;  %v3007_v25 = vld [vmem:[%s4205_s1 + $0x2c] ss:$16 sps:$4 sm:$0xff]   ;;  %v3009_v26 = vld [vmem:[%s4205_s1 + $0x20] ss:$16 sps:$4 sm:$0xff]  }
   0xa   :  { %v3010_v27 = vld [vmem:[%s4205_s1 + $0x28] ss:$16 sps:$4 sm:$0xff]   ;;  %v3011_v28 = vld [vmem:[%s4205_s1 + $0x4] ss:$16 sps:$4 sm:$0xff]   ;;  %v3013_v29 = vld [vmem:[%s4205_s1 + $0xc] ss:$16 sps:$4 sm:$0xff]  }
   0xb   :  { %427 = vmatpush1.bf16.msra.mxu0 %v2985_v10  ;;  %580 = vmatpush1.bf16.msra.mxu1 %v2986_v11  ;;  %v3025_v30 = vld [vmem:[%s4204_s0 + $0x4] ss:$8 sps:$4 sm:$0xff]   ;;  %v3015_v31 = vld [vmem:[%s4205_s1] ss:$16 sps:$4 sm:$0xff]   ;;  %v3016_v32 = vld [vmem:[%s4205_s1 + $0x8] ss:$16 sps:$4 sm:$0xff]  }
   0xc   :  { %428 = vmatprep.subr.bf16.mxu0 %v2987_v12  ;;  %581 = vmatprep.subr.bf16.mxu1 %v2989_v13  ;;  %v3017_v33 = vld [vmem:[%s4205_s1 + $0x104] ss:$16 sps:$4 sm:$0x3f]   ;;  %v3019_v34 = vld [vmem:[%s4205_s1 + $0x10c] ss:$16 sps:$4 sm:$0x3f]  }
   0xd   :  { %2675 = vmatprep.mubr.msk.bf16.mxu0 %vm372_vm0, %v3025_v30  ;;  %2688 = vmatprep.mubr.msk.bf16.mxu1 %vm372_vm0, %v3025_v30  ;;  %v3021_v35 = vld [vmem:[%s4205_s1 + $0x100] ss:$16 sps:$4 sm:$0x3f]   ;;  %v3022_v36 = vld [vmem:[%s4205_s1 + $0x108] ss:$16 sps:$4 sm:$0x3f]  }
   0xe   :  { %v411_v37 = vsel %vm409_vm1, %v3021_v35, 0  ;;  %v417_v38 = vsel %vm409_vm1, %v3022_v36, 0  ;;  %v3023_v39 = vld [vmem:[%s4204_s0] ss:$8 sps:$4 sm:$0xff]   ;;  %v3026_v40 = vld [vmem:[%s4204_s0 + $0x14] ss:$8 sps:$4 sm:$0xff]  }
   0xf   :  { %429 = vmatpush1.bf16.msra.mxu0 %v2991_v14  ;;  %582 = vmatpush1.bf16.msra.mxu1 %v2992_v15  ;;  %v3028_v41 = vld [vmem:[%s4204_s0 + $0x10] ss:$8 sps:$4 sm:$0xff]   ;;  %v3029_v42 = vld [vmem:[%s4204_s0 + $0x24] ss:$8 sps:$4 sm:$0xff]   ;;  %v3031_v43 = vld [vmem:[%s4204_s0 + $0x20] ss:$8 sps:$4 sm:$0xff]  }
  0x10   :  { %430 = vmatprep.subr.bf16.mxu0 %v2993_v16  ;;  %583 = vmatprep.subr.bf16.mxu1 %v2995_v17  ;;  %v3032_v44 = vld [vmem:[%s4204_s0 + $0x34] ss:$8 sps:$4 sm:$0xff]   ;;  %v3034_v45 = vld [vmem:[%s4204_s0 + $0x30] ss:$8 sps:$4 sm:$0xff]   ;;  %v3035_v46 = vld [vmem:[%s4204_s0 + $0x44] ss:$8 sps:$4 sm:$0xff]  }
  0x11   :  { %v3037_v47 = vld [vmem:[%s4204_s0 + $0x40] ss:$8 sps:$4 sm:$0xff]   ;;  %v3038_v48 = vld [vmem:[%s4204_s0 + $0x54] ss:$8 sps:$4 sm:$0xff]   ;;  %v3040_v49 = vld [vmem:[%s4204_s0 + $0x50] ss:$8 sps:$4 sm:$0xff]  }
  0x12   :  { %v3041_v50 = vld [vmem:[%s4204_s0 + $0x64] ss:$8 sps:$4 sm:$0xff]   ;;  %v3043_v51 = vld [vmem:[%s4204_s0 + $0x60] ss:$8 sps:$4 sm:$0xff]   ;;  %v3044_v52 = vld [vmem:[%s4204_s0 + $0x74] ss:$8 sps:$4 sm:$0xff]  }
  0x13   :  { %431 = vmatpush1.bf16.msra.mxu0 %v2997_v18  ;;  %584 = vmatpush1.bf16.msra.mxu1 %v2998_v19  ;;  %v3046_v53 = vld [vmem:[%s4204_s0 + $0x70] ss:$8 sps:$4 sm:$0xff]   ;;  %v3047_v54 = vld [vmem:[%s4204_s0 + $0x84] ss:$8 sps:$4 sm:$0xff]  }
  0x14   :  { %432 = vmatprep.subr.bf16.mxu0 %v2999_v20  ;;  %585 = vmatprep.subr.bf16.mxu1 %v3001_v21 }
  0x17   :  { %433 = vmatpush1.bf16.msra.mxu0 %v3003_v22  ;;  %586 = vmatpush1.bf16.msra.mxu1 %v3004_v23 }
  0x18   :  { %434 = vmatprep.subr.bf16.mxu0 %v3005_v24  ;;  %587 = vmatprep.subr.bf16.mxu1 %v3007_v25 }
  0x1b   :  { %435 = vmatpush1.bf16.msra.mxu0 %v3009_v26  ;;  %588 = vmatpush1.bf16.msra.mxu1 %v3010_v27 }
  0x1c   :  { %436 = vmatprep.subr.bf16.mxu0 %v3011_v28  ;;  %589 = vmatprep.subr.bf16.mxu1 %v3013_v29 }
  0x1f   :  { %437 = vmatpush1.bf16.msra.mxu0 %v3015_v31  ;;  %590 = vmatpush1.bf16.msra.mxu1 %v3016_v32 }
  0x20   :  { %2674 = vmatprep.subr.msk.bf16.mxu0 %vm409_vm1, %v3017_v33  ;;  %2687 = vmatprep.subr.msk.bf16.mxu1 %vm409_vm1, %v3019_v34 }
  0x23   :  { %453 = vmatpush2.bf16.msra.mxu0 %v411_v37  ;;  %606 = vmatpush2.bf16.msra.mxu1 %v417_v38 }
  0x26   :  { %455 = vmatmul.mubr.bf16.vlgmr.msra.gmra.mxu0 %v3023_v39  ;;  %608 = vmatmul.mubr.bf16.vlgmr.msra.gmra.mxu1 %v3023_v39 }
  0x27   :  { %2689 = vmatprep.mubr.msk.bf16.mxu1 %vm372_vm0, %v3026_v40  ;;  %2676 = vmatprep.mubr.msk.bf16.mxu0 %vm372_vm0, %v3026_v40 }
  0x2e   :  { %618 = vmatmul.mubr.bf16.gmra.mxu1 %v3028_v41  ;;  %465 = vmatmul.mubr.bf16.gmra.mxu0 %v3028_v41 }
  0x2f   :  { %2690 = vmatprep.mubr.msk.bf16.mxu1 %vm372_vm0, %v3029_v42  ;;  %2677 = vmatprep.mubr.msk.bf16.mxu0 %vm372_vm0, %v3029_v42 }
  0x36   :  { %628 = vmatmul.mubr.bf16.gmra.mxu1 %v3031_v43  ;;  %475 = vmatmul.mubr.bf16.gmra.mxu0 %v3031_v43 }
  0x37   :  { %2691 = vmatprep.mubr.msk.bf16.mxu1 %vm372_vm0, %v3032_v44  ;;  %2678 = vmatprep.mubr.msk.bf16.mxu0 %vm372_vm0, %v3032_v44 }
  0x3e   :  { %638 = vmatmul.mubr.bf16.gmra.mxu1 %v3034_v45  ;;  %485 = vmatmul.mubr.bf16.gmra.mxu0 %v3034_v45 }
  0x3f   :  { %2692 = vmatprep.mubr.msk.bf16.mxu1 %vm372_vm0, %v3035_v46  ;;  %2679 = vmatprep.mubr.msk.bf16.mxu0 %vm372_vm0, %v3035_v46 }
  0x46   :  { %648 = vmatmul.mubr.bf16.gmra.mxu1 %v3037_v47  ;;  %495 = vmatmul.mubr.bf16.gmra.mxu0 %v3037_v47 }
  0x47   :  { %2693 = vmatprep.mubr.msk.bf16.mxu1 %vm372_vm0, %v3038_v48  ;;  %2680 = vmatprep.mubr.msk.bf16.mxu0 %vm372_vm0, %v3038_v48 }
  0x4e   :  { %658 = vmatmul.mubr.bf16.gmra.mxu1 %v3040_v49  ;;  %505 = vmatmul.mubr.bf16.gmra.mxu0 %v3040_v49 }
  0x4f   :  { %2694 = vmatprep.mubr.msk.bf16.mxu1 %vm372_vm0, %v3041_v50  ;;  %2681 = vmatprep.mubr.msk.bf16.mxu0 %vm372_vm0, %v3041_v50 }
  0x56   :  { %668 = vmatmul.mubr.bf16.gmra.mxu1 %v3043_v51  ;;  %515 = vmatmul.mubr.bf16.gmra.mxu0 %v3043_v51 }
  0x57   :  { %2695 = vmatprep.mubr.msk.bf16.mxu1 %vm372_vm0, %v3044_v52  ;;  %2682 = vmatprep.mubr.msk.bf16.mxu0 %vm372_vm0, %v3044_v52 }
  0x58   :  { %12 = vsyncpa [#allocation3], 0  ;;  %v3049_v55 = vld [vmem:[%s4204_s0 + $0x80] ss:$8 sps:$4 sm:$0xff]   ;;  %v3050_v56 = vld [vmem:[%s4204_s0 + $0x94] ss:$8 sps:$4 sm:$0xff]  }
  0x59   :  { %v3052_v57 = vld [vmem:[%s4204_s0 + $0x90] ss:$8 sps:$4 sm:$0xff]   ;;  %v3053_v58 = vld [vmem:[%s4204_s0 + $0xa4] ss:$8 sps:$4 sm:$0xff]   ;;  %v3055_v59 = vld [vmem:[%s4204_s0 + $0xa0] ss:$8 sps:$4 sm:$0xff]  }
  0x5a   :  { %v3056_v60 = vld [vmem:[%s4204_s0 + $0xb4] ss:$8 sps:$4 sm:$0xff]   ;;  %v3058_v61 = vld [vmem:[%s4204_s0 + $0xb0] ss:$8 sps:$4 sm:$0xff]   ;;  %s3165_s27 = smov 96   ;;  %s3166_s28 = smov 64  }
  0x5b   :  { %vm872_vm2 = vcmask 785408   ;;  %vm1113_vm3 = vcmask 523264   ;;  %vm1236_vm4 = vcmask 261120   ;;  %s3169_s0 = smov 32   ;;  %vm3171_vm5 = vmmov 0  }
  0x5e   :  { %678 = vmatmul.mubr.bf16.gmra.mxu1 %v3046_v53  ;;  %525 = vmatmul.mubr.bf16.gmra.mxu0 %v3046_v53 }
  0x5f   :  { %2696 = vmatprep.mubr.msk.bf16.mxu1 %vm372_vm0, %v3047_v54  ;;  %2683 = vmatprep.mubr.msk.bf16.mxu0 %vm372_vm0, %v3047_v54 }
  0x66   :  { %688 = vmatmul.mubr.bf16.gmra.mxu1 %v3049_v55  ;;  %535 = vmatmul.mubr.bf16.gmra.mxu0 %v3049_v55 }
  0x67   :  { %2697 = vmatprep.mubr.msk.bf16.mxu1 %vm372_vm0, %v3050_v56  ;;  %2684 = vmatprep.mubr.msk.bf16.mxu0 %vm372_vm0, %v3050_v56 }
  0x6e   :  { %698 = vmatmul.mubr.bf16.gmra.mxu1 %v3052_v57  ;;  %545 = vmatmul.mubr.bf16.gmra.mxu0 %v3052_v57 }
  0x6f   :  { %2698 = vmatprep.mubr.msk.bf16.mxu1 %vm372_vm0, %v3053_v58  ;;  %2685 = vmatprep.mubr.msk.bf16.mxu0 %vm372_vm0, %v3053_v58 }
  0x76   :  { %708 = vmatmul.mubr.bf16.gmra.mxu1 %v3055_v59  ;;  %555 = vmatmul.mubr.bf16.gmra.mxu0 %v3055_v59 }
  0x77   :  { %2699 = vmatprep.mubr.msk.bf16.mxu1 %vm372_vm0, %v3056_v60  ;;  %2686 = vmatprep.mubr.msk.bf16.mxu0 %vm372_vm0, %v3056_v60 }
  0x7e   :  { %718 = vmatmul.mubr.bf16.gmra.mxu1 %v3058_v61  ;;  %565 = vmatmul.mubr.bf16.gmra.mxu0 %v3058_v61 }
  0xe6   :  { %v3417_v62 = vpop.f32.mrf.mxu0  ;;  %v609_v63 = vpop.f32.mrf.mxu1 }
  0xe7   :  { %778 = vrot.lane.b32.xlu0 %v609_v63, %s3165_s27 }
  0xe8   :  { %v3420_v0 = vpop.f32.mrf.mxu0  ;;  %v611_v1 = vpop.f32.mrf.mxu1 }
  0xe9   :  { %1019 = vrot.lane.b32.xlu1 %v611_v1, %s3166_s28 }
  0xea   :  { %v3424_v2 = vpop.f32.mrf.mxu0  ;;  %v613_v3 = vpop.f32.mrf.mxu1 }
  0xeb   :  { %1017 = vrot.lane.b32.xlu0 %v609_v63, %s3166_s28 }
  0xec   :  { %v3429_v4 = vpop.f32.mrf.mxu0  ;;  %v615_v5 = vpop.f32.mrf.mxu1 }
  0xed   :  { %782 = vrot.lane.b32.xlu1 %v613_v3, %s3165_s27 }
  0xee   :  { %v619_v6 = vpop.f32.mrf.mxu1  ;;  %v3435_v7 = vpop.f32.mrf.mxu0 }
  0xef   :  { %776 = vrot.lane.b32.xlu0 %v3420_v0, %s3165_s27 }
  0xf0   :  { %v621_v8 = vpop.f32.mrf.mxu1  ;;  %v3439_v9 = vpop.f32.mrf.mxu0 }
  0xf1   :  { %780 = vrot.lane.b32.xlu1 %v3429_v4, %s3165_s27 }
  0xf2   :  { %v623_v10 = vpop.f32.mrf.mxu1  ;;  %v3444_v11 = vpop.f32.mrf.mxu0 }
  0xf3   :  { %1021 = vrot.lane.b32.xlu0 %v613_v3, %s3166_s28 }
  0xf4   :  { %v3448_v12 = vpop.f32.mrf.mxu0  ;;  %v625_v13 = vpop.f32.mrf.mxu1 }
  0xf5   :  { %1023 = vrot.lane.b32.xlu1 %v615_v5, %s3166_s28 }
  0xf6   :  { %v629_v14 = vpop.f32.mrf.mxu1  ;;  %v3453_v15 = vpop.f32.mrf.mxu0 }
  0xf7   :  { %1025 = vrot.lane.b32.xlu0 %v619_v6, %s3166_s28 }
  0xf8   :  { %v631_v16 = vpop.f32.mrf.mxu1  ;;  %v3457_v17 = vpop.f32.mrf.mxu0 }
  0xf9   :  { %786 = vrot.lane.b32.xlu1 %v619_v6, %s3165_s27 }
  0xfa   :  { %v633_v18 = vpop.f32.mrf.mxu1  ;;  %v3462_v19 = vpop.f32.mrf.mxu0 }
  0xfb   :  { %784 = vrot.lane.b32.xlu0 %v3439_v9, %s3165_s27 }
  0xfc   :  { %v3466_v20 = vpop.f32.mrf.mxu0  ;;  %v635_v21 = vpop.f32.mrf.mxu1 }
  0xfd   :  { %1027 = vrot.lane.b32.xlu1 %v621_v8, %s3166_s28 }
  0xfe   :  { %v639_v22 = vpop.f32.mrf.mxu1  ;;  %v3471_v23 = vpop.f32.mrf.mxu0 }
  0xff   :  { %1029 = vrot.lane.b32.xlu0 %v623_v10, %s3166_s28 }
 0x100   :  { %v641_v24 = vpop.f32.mrf.mxu1  ;;  %v3475_v25 = vpop.f32.mrf.mxu0 }
 0x101   :  { %790 = vrot.lane.b32.xlu1 %v623_v10, %s3165_s27 }
 0x102   :  { %v643_v26 = vpop.f32.mrf.mxu1  ;;  %v3480_v27 = vpop.f32.mrf.mxu0 }
 0x103   :  { %788 = vrot.lane.b32.xlu0 %v3448_v12, %s3165_s27 }
 0x104   :  { %v3484_v28 = vpop.f32.mrf.mxu0  ;;  %v645_v29 = vpop.f32.mrf.mxu1 }
 0x105   :  { %1031 = vrot.lane.b32.xlu1 %v625_v13, %s3166_s28 }
 0x106   :  { %v649_v30 = vpop.f32.mrf.mxu1  ;;  %v3489_v31 = vpop.f32.mrf.mxu0 }
 0x107   :  { %1033 = vrot.lane.b32.xlu0 %v629_v14, %s3166_s28 }
 0x108   :  { %v651_v32 = vpop.f32.mrf.mxu1  ;;  %v3493_v33 = vpop.f32.mrf.mxu0 }
 0x109   :  { %794 = vrot.lane.b32.xlu1 %v629_v14, %s3165_s27 }
 0x10a   :  { %v653_v34 = vpop.f32.mrf.mxu1  ;;  %v3498_v35 = vpop.f32.mrf.mxu0 }
 0x10b   :  { %792 = vrot.lane.b32.xlu0 %v3457_v17, %s3165_s27 }
 0x10c   :  { %v3502_v36 = vpop.f32.mrf.mxu0  ;;  %v655_v37 = vpop.f32.mrf.mxu1 }
 0x10d   :  { %1035 = vrot.lane.b32.xlu1 %v631_v16, %s3166_s28 }
 0x10e   :  { %v659_v38 = vpop.f32.mrf.mxu1  ;;  %v3507_v39 = vpop.f32.mrf.mxu0 }
 0x10f   :  { %1037 = vrot.lane.b32.xlu0 %v633_v18, %s3166_s28 }
 0x110   :  { %v661_v40 = vpop.f32.mrf.mxu1  ;;  %v3511_v41 = vpop.f32.mrf.mxu0 }
 0x111   :  { %798 = vrot.lane.b32.xlu1 %v633_v18, %s3165_s27 }
 0x112   :  { %v663_v42 = vpop.f32.mrf.mxu1  ;;  %v3516_v43 = vpop.f32.mrf.mxu0 }
 0x113   :  { %796 = vrot.lane.b32.xlu0 %v3466_v20, %s3165_s27 }
 0x114   :  { %v3520_v44 = vpop.f32.mrf.mxu0  ;;  %v665_v45 = vpop.f32.mrf.mxu1 }
 0x115   :  { %1039 = vrot.lane.b32.xlu1 %v635_v21, %s3166_s28 }
 0x116   :  { %v669_v46 = vpop.f32.mrf.mxu1  ;;  %v3525_v47 = vpop.f32.mrf.mxu0 }
 0x117   :  { %1041 = vrot.lane.b32.xlu0 %v639_v22, %s3166_s28 }
 0x118   :  { %v671_v48 = vpop.f32.mrf.mxu1  ;;  %v3529_v49 = vpop.f32.mrf.mxu0 }
 0x119   :  { %802 = vrot.lane.b32.xlu1 %v639_v22, %s3165_s27 }
 0x11a   :  { %v673_v50 = vpop.f32.mrf.mxu1  ;;  %v3534_v51 = vpop.f32.mrf.mxu0 }
 0x11b   :  { %800 = vrot.lane.b32.xlu0 %v3475_v25, %s3165_s27 }
 0x11c   :  { %v3538_v52 = vpop.f32.mrf.mxu0  ;;  %v675_v53 = vpop.f32.mrf.mxu1 }
 0x11d   :  { %1043 = vrot.lane.b32.xlu1 %v641_v24, %s3166_s28 }
 0x11e   :  { %v679_v54 = vpop.f32.mrf.mxu1  ;;  %v3543_v55 = vpop.f32.mrf.mxu0 }
 0x11f   :  { %1045 = vrot.lane.b32.xlu0 %v643_v26, %s3166_s28 }
 0x120   :  { %v681_v57 = vpop.f32.mrf.mxu1  ;;  %v3549_v58 = vpop.f32.mrf.mxu0 }
 0x121   :  { %806 = vrot.lane.b32.xlu1 %v643_v26, %s3165_s27 }
 0x122   :  { %v683_v61 = vpop.f32.mrf.mxu1  ;;  %v3558_v63 = vpop.f32.mrf.mxu0 }
 0x123   :  { %804 = vrot.lane.b32.xlu0 %v3484_v28, %s3165_s27 }
 0x124   :  { %v3566_v5 = vpop.f32.mrf.mxu0  ;;  %v685_v8 = vpop.f32.mrf.mxu1 }
 0x125   :  { %1047 = vrot.lane.b32.xlu1 %v645_v29, %s3166_s28 }
 0x126   :  { %v689_v13 = vpop.f32.mrf.mxu1  ;;  %v3575_v14 = vpop.f32.mrf.mxu0 }
 0x127   :  { %1049 = vrot.lane.b32.xlu0 %v649_v30, %s3166_s28 }
 0x128   :  { %v691_v21 = vpop.f32.mrf.mxu1  ;;  %v3583_v22 = vpop.f32.mrf.mxu0 }
 0x129   :  { %810 = vrot.lane.b32.xlu1 %v649_v30, %s3165_s27 }
 0x12a   :  { %v693_v29 = vpop.f32.mrf.mxu1  ;;  %v3592_v30 = vpop.f32.mrf.mxu0 }
 0x12b   :  { %808 = vrot.lane.b32.xlu0 %v3493_v33, %s3165_s27 }
 0x12d   :  { %1051 = vrot.lane.b32.xlu1 %v651_v32, %s3166_s28 }
 0x12f   :  { %1053 = vrot.lane.b32.xlu0 %v653_v34, %s3166_s28 }
 0x131   :  { %814 = vrot.lane.b32.xlu1 %v653_v34, %s3165_s27 }
 0x133   :  { %812 = vrot.lane.b32.xlu0 %v3502_v36, %s3165_s27 }
 0x135   :  { %1055 = vrot.lane.b32.xlu1 %v655_v37, %s3166_s28  ;;  %v3598_v37 = vpop.f32.mrf.mxu0 }
 0x137   :  { %1057 = vrot.lane.b32.xlu0 %v659_v38, %s3166_s28 }
 0x139   :  { %818 = vrot.lane.b32.xlu1 %v659_v38, %s3165_s27 }
 0x13b   :  { %816 = vrot.lane.b32.xlu0 %v3511_v41, %s3165_s27 }
 0x13d   :  { %1059 = vrot.lane.b32.xlu1 %v661_v40, %s3166_s28  ;;  %v695_v40 = vpop.f32.mrf.mxu1 }
 0x13f   :  { %1061 = vrot.lane.b32.xlu0 %v663_v42, %s3166_s28 }
 0x141   :  { %822 = vrot.lane.b32.xlu1 %v663_v42, %s3165_s27 }
 0x143   :  { %820 = vrot.lane.b32.xlu0 %v3520_v44, %s3165_s27 }
 0x145   :  { %1063 = vrot.lane.b32.xlu1 %v665_v45, %s3166_s28  ;;  %v699_v45 = vpop.f32.mrf.mxu1 }
 0x147   :  { %1065 = vrot.lane.b32.xlu0 %v669_v46, %s3166_s28 }
 0x149   :  { %826 = vrot.lane.b32.xlu1 %v669_v46, %s3165_s27 }
 0x14b   :  { %824 = vrot.lane.b32.xlu0 %v3529_v49, %s3165_s27 }
 0x14d   :  { %1067 = vrot.lane.b32.xlu1 %v671_v48, %s3166_s28  ;;  %v3604_v48 = vpop.f32.mrf.mxu0 }
 0x14e   :  { %4213 = vst [vmem:[#allocation5_spill] sm:$0xff] %v3604_v48 }
 0x14f   :  { %1069 = vrot.lane.b32.xlu0 %v673_v50, %s3166_s28 }
 0x151   :  { %830 = vrot.lane.b32.xlu1 %v673_v50, %s3165_s27 }
 0x153   :  { %828 = vrot.lane.b32.xlu0 %v3538_v52, %s3165_s27 }
 0x155   :  { %1071 = vrot.lane.b32.xlu1 %v675_v53, %s3166_s28 }
 0x157   :  { %1073 = vrot.lane.b32.xlu0 %v679_v54, %s3166_s28 }
 0x159   :  { %v3546_v56 = vpop.permute.xlu0 %778  ;;  %834 = vrot.lane.b32.xlu1 %v679_v54, %s3165_s27 }
 0x15b   :  { %v3551_v59 = vpop.permute.xlu1 %1019  ;;  %832 = vrot.lane.b32.xlu0 %v3549_v58, %s3165_s27 }
 0x15d   :  { %v3555_v60 = vpop.permute.xlu0 %1017  ;;  %1075 = vrot.lane.b32.xlu1 %v681_v57, %s3166_s28 }
 0x15f   :  { %v3560_v1 = vpop.permute.xlu1 %782  ;;  %1077 = vrot.lane.b32.xlu0 %v683_v61, %s3166_s28 }
 0x161   :  { %v3563_v3 = vpop.permute.xlu0 %776  ;;  %838 = vrot.lane.b32.xlu1 %v683_v61, %s3165_s27 }
 0x163   :  { %v3568_v6 = vpop.permute.xlu1 %780  ;;  %836 = vrot.lane.b32.xlu0 %v3566_v5, %s3165_s27 }
 0x165   :  { %v3572_v10 = vpop.permute.xlu0 %1021  ;;  %1079 = vrot.lane.b32.xlu1 %v685_v8, %s3166_s28 }
 0x167   :  { %v3577_v16 = vpop.permute.xlu1 %1023  ;;  %1081 = vrot.lane.b32.xlu0 %v689_v13, %s3166_s28 }
 0x169   :  { %v3580_v18 = vpop.permute.xlu0 %1025  ;;  %842 = vrot.lane.b32.xlu1 %v689_v13, %s3165_s27 }
 0x16b   :  { %v3585_v24 = vpop.permute.xlu1 %786  ;;  %840 = vrot.lane.b32.xlu0 %v3583_v22, %s3165_s27 }
 0x16d   :  { %1083 = vrot.lane.b32.xlu1 %v691_v21, %s3166_s28  ;;  %v3590_v26 = vpop.permute.xlu0 %784  ;;  %v701_v21 = vpop.f32.mrf.mxu1 }
 0x16f   :  { %v3594_v32 = vpop.permute.xlu1 %1027  ;;  %1085 = vrot.lane.b32.xlu0 %v693_v29, %s3166_s28 }
 0x171   :  { %846 = vrot.lane.b32.xlu1 %v693_v29, %s3165_s27  ;;  %v1030_v34 = vpop.permute.xlu0 %1029  ;;  %v3611_v29 = vpop.f32.mrf.mxu0 }
 0x173   :  { %v791_v38 = vpop.permute.xlu1 %790  ;;  %844 = vrot.lane.b32.xlu0 %v3598_v37, %s3165_s27 }
 0x174   :  { %v952_v46 = vmax.f32 %v3448_v12, %v791_v38 }
 0x175   :  { %1087 = vrot.lane.b32.xlu1 %v695_v40, %s3166_s28  ;;  %v789_v42 = vpop.permute.xlu0 %788  ;;  %v3616_v40 = vpop.f32.mrf.mxu0 }
 0x176   :  { %v876_v50 = vsel %vm872_vm2, %v789_v42, %v791_v38  ;;  %v703_v38 = vpop.f32.mrf.mxu1 }
 0x177   :  { %v951_v53 = vmax.f32 %v3444_v11, %v876_v50  ;;  %v1032_v54 = vpop.permute.xlu1 %1031  ;;  %1089 = vrot.lane.b32.xlu0 %v699_v45, %s3166_s28  ;;  %v3625_v48 = vpop.f32.mrf.mxu0 }
 0x178   :  { %v1117_v57 = vsel %vm1113_vm3, %v1030_v34, %v1032_v54  ;;  %v1193_v61 = vmax.f32 %v952_v46, %v1032_v54 }
 0x179   :  { %v1192_v8 = vmax.f32 %v951_v53, %v1117_v57  ;;  %850 = vrot.lane.b32.xlu1 %v699_v45, %s3165_s27  ;;  %v1034_v13 = vpop.permute.xlu0 %1033 }
 0x17b   :  { %v795_v12 = vpop.permute.xlu1 %794  ;;  %848 = vrot.lane.b32.xlu0 %v3611_v29, %s3165_s27 }
 0x17c   :  { %v954_v34 = vmax.f32 %v3457_v17, %v795_v12 }
 0x17d   :  { %1091 = vrot.lane.b32.xlu1 %v701_v21, %s3166_s28  ;;  %v793_v11 = vpop.permute.xlu0 %792  ;;  %v1244_v21 = vsel %vm1236_vm4, %v1193_v61, -inf }
 0x17e   :  { %v877_v42 = vsel %vm872_vm2, %v793_v11, %v795_v12 }
 0x17f   :  { %v953_v45 = vmax.f32 %v3453_v15, %v877_v42  ;;  %v1036_v46 = vpop.permute.xlu1 %1035  ;;  %1093 = vrot.lane.b32.xlu0 %v703_v38, %s3166_s28  ;;  %v705_v42 = vpop.f32.mrf.mxu1 }
 0x180   :  { %v1118_v50 = vsel %vm1113_vm3, %v1034_v13, %v1036_v46  ;;  %v1195_v53 = vmax.f32 %v954_v34, %v1036_v46  ;;  %v3630_v13 = vpop.f32.mrf.mxu0 }
 0x181   :  { %v1194_v54 = vmax.f32 %v953_v45, %v1118_v50  ;;  %854 = vrot.lane.b32.xlu1 %v703_v38, %s3165_s27  ;;  %v1038_v57 = vpop.permute.xlu0 %1037  ;;  %4214 = vst [vmem:[#allocation6_spill] sm:$0xff] %v3630_v13  ;;  %v709_v38 = vpop.f32.mrf.mxu1 }
 0x182   :  { %v1245_v17 = vsel %vm1236_vm4, %v1195_v53, -inf }
 0x183   :  { %v1242_v12 = vmax.f32 %v1192_v8, %v1194_v54  ;;  %v1246_v11 = vmax.f32 %v1244_v21, %v1245_v17  ;;  %v799_v15 = vpop.permute.xlu1 %798  ;;  %852 = vrot.lane.b32.xlu0 %v3625_v48, %s3165_s27  ;;  %v3637_v8 = vpop.f32.mrf.mxu0 }
 0x184   :  { %v956_v45 = vmax.f32 %v3466_v20, %v799_v15 }
 0x185   :  { %1095 = vrot.lane.b32.xlu1 %v705_v42, %s3166_s28  ;;  %v797_v34 = vpop.permute.xlu0 %796  ;;  %v711_v42 = vpop.f32.mrf.mxu1 }
 0x186   :  { %v878_v61 = vsel %vm872_vm2, %v797_v34, %v799_v15  ;;  %v3648_v34 = vpop.f32.mrf.mxu0 }
 0x187   :  { %v955_v46 = vmax.f32 %v3462_v19, %v878_v61  ;;  %v1040_v50 = vpop.permute.xlu1 %1039  ;;  %1097 = vrot.lane.b32.xlu0 %v709_v38, %s3166_s28  ;;  %4215 = vst [vmem:[#allocation7_spill] sm:$0xff] %v3648_v34 }
 0x188   :  { %v1119_v53 = vsel %vm1113_vm3, %v1038_v57, %v1040_v50  ;;  %v1197_v54 = vmax.f32 %v956_v45, %v1040_v50  ;;  %v713_v45 = vpop.f32.mrf.mxu1 }
 0x189   :  { %v1196_v21 = vmax.f32 %v955_v46, %v1119_v53  ;;  %858 = vrot.lane.b32.xlu1 %v709_v38, %s3165_s27  ;;  %v1042_v17 = vpop.permute.xlu0 %1041 }
 0x18a   :  { %v1247_v13 = vsel %vm1236_vm4, %v1197_v54, -inf }
 0x18b   :  { %v3642_v20 = vmax.f32 %v1242_v12, %v1196_v21  ;;  %v3644_v15 = vmax.f32 %v1246_v11, %v1247_v13  ;;  %v803_v19 = vpop.permute.xlu1 %802  ;;  %856 = vrot.lane.b32.xlu0 %v3637_v8, %s3165_s27  ;;  %v3655_v11 = vpop.f32.mrf.mxu0 }
 0x18c   :  { %v958_v38 = vmax.f32 %v3475_v25, %v803_v19  ;;  %4216 = vst [vmem:[#allocation8_spill] sm:$0xff] %v3655_v11  ;;  %v715_v25 = vpop.f32.mrf.mxu1 }
 0x18d   :  { %1099 = vrot.lane.b32.xlu1 %v711_v42, %s3166_s28  ;;  %v801_v57 = vpop.permute.xlu0 %800  ;;  %v3659_v21 = vpop.f32.mrf.mxu0 }
 0x18e   :  { %v879_v61 = vsel %vm872_vm2, %v801_v57, %v803_v19  ;;  %4217 = vst [vmem:[#allocation9_spill] sm:$0xff] %v3659_v21  ;;  %v719_v19 = vpop.f32.mrf.mxu1 }
 0x18f   :  { %v957_v46 = vmax.f32 %v3471_v23, %v879_v61  ;;  %v1044_v12 = vpop.permute.xlu1 %1043  ;;  %1101 = vrot.lane.b32.xlu0 %v713_v45, %s3166_s28 }
 0x190   :  { %v1120_v13 = vsel %vm1113_vm3, %v1042_v17, %v1044_v12  ;;  %v1199_v50 = vmax.f32 %v958_v38, %v1044_v12  ;;  %v3666_v38 = vpop.f32.mrf.mxu0 }
 0x191   :  { %v1198_v53 = vmax.f32 %v957_v46, %v1120_v13  ;;  %862 = vrot.lane.b32.xlu1 %v713_v45, %s3165_s27  ;;  %v1046_v54 = vpop.permute.xlu0 %1045 }
 0x192   :  { %v1251_v34 = vsel %vm1236_vm4, %v1199_v50, -inf  ;;  %v3674_v21 = vpop.f32.mrf.mxu0 }
 0x193   :  { %v807_v42 = vpop.permute.xlu1 %806  ;;  %860 = vrot.lane.b32.xlu0 %v3655_v11, %s3165_s27 }
 0x194   :  { %v960_v57 = vmax.f32 %v3484_v28, %v807_v42 }
 0x195   :  { %1103 = vrot.lane.b32.xlu1 %v715_v25, %s3166_s28  ;;  %v805_v23 = vpop.permute.xlu0 %804 }
 0x196   :  { %v880_v17 = vsel %vm872_vm2, %v805_v23, %v807_v42 }
 0x197   :  { %v959_v45 = vmax.f32 %v3480_v27, %v880_v17  ;;  %v1048_v61 = vpop.permute.xlu1 %1047  ;;  %1105 = vrot.lane.b32.xlu0 %v719_v19, %s3166_s28  ;;  %v721_v27 = vpop.f32.mrf.mxu1 }
 0x198   :  { %v1121_v46 = vsel %vm1113_vm3, %v1046_v54, %v1048_v61  ;;  %v1201_v12 = vmax.f32 %v960_v57, %v1048_v61  ;;  %v3679_v57 = vpop.f32.mrf.mxu0 }
 0x199   :  { %v1200_v13 = vmax.f32 %v959_v45, %v1121_v46  ;;  %866 = vrot.lane.b32.xlu1 %v719_v19, %s3165_s27  ;;  %v1050_v25 = vpop.permute.xlu0 %1049 }
 0x19a   :  { %v1252_v28 = vsel %vm1236_vm4, %v1201_v12, -inf }
 0x19b   :  { %v1249_v42 = vmax.f32 %v1198_v53, %v1200_v13  ;;  %v1253_v23 = vmax.f32 %v1251_v34, %v1252_v28  ;;  %v811_v11 = vpop.permute.xlu1 %810  ;;  %864 = vrot.lane.b32.xlu0 %v3666_v38, %s3165_s27  ;;  %v723_v34 = vpop.f32.mrf.mxu1 }
 0x19c   :  { %v962_v19 = vmax.f32 %v3493_v33, %v811_v11 }
 0x19d   :  { %1107 = vrot.lane.b32.xlu1 %v721_v27, %s3166_s28  ;;  %v809_v54 = vpop.permute.xlu0 %808 }
 0x19e   :  { %v881_v50 = vsel %vm872_vm2, %v809_v54, %v811_v11 }
 0x19f   :  { %v961_v17 = vmax.f32 %v3489_v31, %v881_v50  ;;  %v1052_v45 = vpop.permute.xlu1 %1051  ;;  %868 = vrot.lane.b32.xlu0 %v3679_v57, %s3165_s27  ;;  %v725_v31 = vpop.f32.mrf.mxu1 }
 0x1a0   :  { %v1122_v53 = vsel %vm1113_vm3, %v1050_v25, %v1052_v45  ;;  %v1203_v61 = vmax.f32 %v962_v19, %v1052_v45 }
 0x1a1   :  { %v1202_v46 = vmax.f32 %v961_v17, %v1122_v53  ;;  %870 = vrot.lane.b32.xlu1 %v723_v34, %s3165_s27  ;;  %v1054_v12 = vpop.permute.xlu0 %1053 }
 0x1a2   :  { %v1254_v13 = vsel %vm1236_vm4, %v1203_v61, -inf }
 0x1a3   :  { %v3689_v28 = vmax.f32 %v1249_v42, %v1202_v46  ;;  %v3691_v33 = vmax.f32 %v1253_v23, %v1254_v13  ;;  %v815_v11 = vpop.permute.xlu1 %814  ;;  %1109 = vrot.lane.b32.xlu0 %v723_v34, %s3166_s28 }
 0x1a4   :  { %v964_v25 = vmax.f32 %v3502_v36, %v815_v11 }
 0x1a5   :  { %1111 = vrot.lane.b32.xlu1 %v725_v31, %s3166_s28  ;;  %v813_v27 = vpop.permute.xlu0 %812 }
 0x1a6   :  { %v882_v54 = vsel %vm872_vm2, %v813_v27, %v815_v11 }
 0x1a7   :  { %v963_v19 = vmax.f32 %v3498_v35, %v882_v54  ;;  %v1056_v50 = vpop.permute.xlu1 %1055 }
 0x1a8   :  { %v1123_v17 = vsel %vm1113_vm3, %v1054_v12, %v1056_v50  ;;  %v1205_v42 = vmax.f32 %v964_v25, %v1056_v50 }
 0x1a9   :  { %v1204_v45 = vmax.f32 %v963_v19, %v1123_v17  ;;  %v1058_v23 = vpop.permute.xlu0 %1057 }
 0x1aa   :  { %v1258_v54 = vsel %vm1236_vm4, %v1205_v42, -inf }
 0x1ab   :  { %v819_v53 = vpop.permute.xlu1 %818 }
 0x1ac   :  { %v966_v34 = vmax.f32 %v3511_v41, %v819_v53 }
 0x1ad   :  { %v817_v61 = vpop.permute.xlu0 %816 }
 0x1ae   :  { %v883_v46 = vsel %vm872_vm2, %v817_v61, %v819_v53 }
 0x1af   :  { %v965_v13 = vmax.f32 %v3507_v39, %v883_v46  ;;  %v1060_v31 = vpop.permute.xlu1 %1059 }
 0x1b0   :  { %v1124_v36 = vsel %vm1113_vm3, %v1058_v23, %v1060_v31  ;;  %v1207_v11 = vmax.f32 %v966_v34, %v1060_v31 }
 0x1b1   :  { %v1206_v27 = vmax.f32 %v965_v13, %v1124_v36  ;;  %v1062_v35 = vpop.permute.xlu0 %1061 }
 0x1b2   :  { %v1259_v12 = vsel %vm1236_vm4, %v1207_v11, -inf }
 0x1b3   :  { %v1256_v25 = vmax.f32 %v1204_v45, %v1206_v27  ;;  %v1260_v19 = vmax.f32 %v1258_v54, %v1259_v12  ;;  %v823_v50 = vpop.permute.xlu1 %822 }
 0x1b4   :  { %v968_v41 = vmax.f32 %v3520_v44, %v823_v50 }
 0x1b5   :  { %v821_v17 = vpop.permute.xlu0 %820 }
 0x1b6   :  { %v884_v53 = vsel %vm872_vm2, %v821_v17, %v823_v50 }
 0x1b7   :  { %v967_v39 = vmax.f32 %v3516_v43, %v884_v53  ;;  %v1064_v61 = vpop.permute.xlu1 %1063 }
 0x1b8   :  { %v1125_v23 = vsel %vm1113_vm3, %v1062_v35, %v1064_v61  ;;  %v1209_v34 = vmax.f32 %v968_v41, %v1064_v61  ;;  %v3065_v61 = vld [vmem:[%s4207_s3 + $0xf8] sm:$0xff]  }
 0x1b9   :  { %v1208_v46 = vmax.f32 %v967_v39, %v1125_v23  ;;  %v1066_v13 = vpop.permute.xlu0 %1065  ;;  %2845 = vmatprep.subr.bf16.mxu1 %v3065_v61 }
 0x1ba   :  { %v1261_v42 = vsel %vm1236_vm4, %v1209_v34, -inf }
 0x1bb   :  { %v3710_v31 = vmax.f32 %v1256_v25, %v1208_v46  ;;  %v3712_v45 = vmax.f32 %v1260_v19, %v1261_v42  ;;  %v827_v36 = vpop.permute.xlu1 %826  ;;  %v3059_v25 = vld [vmem:[%s4207_s3 + $0x78] sm:$0xff]   ;;  %v3062_v46 = vld [vmem:[%s4207_s3 + $0x30] sm:$0xff]  }
 0x1bc   :  { %v970_v44 = vmax.f32 %v3529_v49, %v827_v36  ;;  %2823 = vmatprep.subr.bf16.mxu0 %v3059_v25  ;;  %v3060_v49 = vld [vmem:[%s4207_s3 + $0x38] sm:$0xff]  }
 0x1bd   :  { %v825_v11 = vpop.permute.xlu0 %824  ;;  %2824 = vmatpush3.bf16.msra.mxu0 %v3060_v49 }
 0x1be   :  { %v885_v27 = vsel %vm872_vm2, %v825_v11, %v827_v36  ;;  %v3063_v36 = vld [vmem:[%s4207_s3 + $0x68] sm:$0xff]  }
 0x1bf   :  { %v969_v43 = vmax.f32 %v3525_v47, %v885_v27  ;;  %v1068_v54 = vpop.permute.xlu1 %1067  ;;  %v3061_v47 = vld [vmem:[%s4207_s3 + $0x70] sm:$0xff]  }
 0x1c0   :  { %v1126_v35 = vsel %vm1113_vm3, %v1066_v13, %v1068_v54  ;;  %v1211_v12 = vmax.f32 %v970_v44, %v1068_v54  ;;  %v3066_v13 = vld [vmem:[%s4207_s3 + $0xb8] sm:$0xff]   ;;  %2825 = vmatprep.subr.bf16.mxu0 %v3061_v47  ;;  %v3070_v27 = vld [vmem:[%s4207_s3 + $0xb0] sm:$0xff]   ;;  %v3074_v47 = vld [vmem:[%s4207_s3 + $0xa8] sm:$0xff]  }
 0x1c1   :  { %v1210_v50 = vmax.f32 %v969_v43, %v1126_v35  ;;  %v1070_v17 = vpop.permute.xlu0 %1069  ;;  %2846 = vmatpush3.bf16.msra.mxu1 %v3066_v13  ;;  %v3073_v35 = vld [vmem:[%s4207_s3 + $0xe8] sm:$0xff]   ;;  %2826 = vmatpush3.bf16.msra.mxu0 %v3062_v46 }
 0x1c2   :  { %v1265_v43 = vsel %vm1236_vm4, %v1211_v12, -inf  ;;  %2827 = vmatprep.subr.bf16.mxu0 %v3063_v36  ;;  %v3067_v12 = vld [vmem:[%s4207_s3 + $0x60] sm:$0xff]  }
 0x1c3   :  { %v831_v41 = vpop.permute.xlu1 %830 }
 0x1c4   :  { %v972_v53 = vmax.f32 %v3538_v52, %v831_v41 }
 0x1c5   :  { %v829_v19 = vpop.permute.xlu0 %828 }
 0x1c6   :  { %v886_v39 = vsel %vm872_vm2, %v829_v19, %v831_v41  ;;  %v3064_v19 = vld [vmem:[%s4207_s3 + $0x28] sm:$0xff]  }
 0x1c7   :  { %v971_v23 = vmax.f32 %v3534_v51, %v886_v39  ;;  %v1072_v34 = vpop.permute.xlu1 %1071  ;;  %v3069_v51 = vld [vmem:[%s4207_s3 + $0xf0] sm:$0xff]   ;;  %v3077_v39 = vld [vmem:[%s4207_s3 + $0xe0] sm:$0xff]   ;;  %2828 = vmatpush3.bf16.msra.mxu0 %v3064_v19 }
 0x1c8   :  { %v1127_v52 = vsel %vm1113_vm3, %v1070_v17, %v1072_v34  ;;  %v1213_v42 = vmax.f32 %v972_v53, %v1072_v34  ;;  %2847 = vmatprep.subr.bf16.mxu1 %v3069_v51  ;;  %v3068_v34 = vld [vmem:[%s4207_s3 + $0x20] sm:$0xff]   ;;  %2829 = vmatprep.subr.bf16.mxu0 %v3067_v12  ;;  %v3081_v51 = vld [vmem:[%s4207_s3 + $0xd8] sm:$0xff]  }
 0x1c9   :  { %v1212_v11 = vmax.f32 %v971_v23, %v1127_v52  ;;  %v1074_v44 = vpop.permute.xlu0 %1073  ;;  %2848 = vmatpush3.bf16.msra.mxu1 %v3070_v27 }
 0x1ca   :  { %v1266_v54 = vsel %vm1236_vm4, %v1213_v42, -inf  ;;  %2849 = vmatprep.subr.bf16.mxu1 %v3073_v35 }
 0x1cb   :  { %v1263_v17 = vmax.f32 %v1210_v50, %v1212_v11  ;;  %v1267_v41 = vmax.f32 %v1265_v43, %v1266_v54  ;;  %v835_v25 = vpop.permute.xlu1 %834  ;;  %2830 = vmatpush3.bf16.msra.mxu0 %v3068_v34  ;;  %v3072_v43 = vld [vmem:[%s4207_s3 + $0x18] sm:$0xff]   ;;  %v3075_v54 = vld [vmem:[%s4207_s3 + $0x50] sm:$0xff]   ;;  %v1293_v34 = vlaneseq }
 0x1cc   :  { %v974_v50 = vmax.f32 %v3549_v58, %v835_v25  ;;  %v3071_v58 = vld [vmem:[%s4207_s3 + $0x58] sm:$0xff]  }
 0x1cd   :  { %v833_v49 = vpop.permute.xlu0 %832  ;;  %2850 = vmatpush3.bf16.msra.mxu1 %v3074_v47  ;;  %2831 = vmatprep.subr.bf16.mxu0 %v3071_v58 }
 0x1ce   :  { %v887_v53 = vsel %vm872_vm2, %v833_v49, %v835_v25  ;;  %2851 = vmatprep.subr.bf16.mxu1 %v3077_v39  ;;  %v3085_v25 = vld [vmem:[%s4207_s3 + $0xd0] sm:$0xff]  }
 0x1cf   :  { %v973_v61 = vmax.f32 %v3543_v55, %v887_v53  ;;  %v1076_v23 = vpop.permute.xlu1 %1075  ;;  %v3078_v55 = vld [vmem:[%s4207_s3 + $0xa0] sm:$0xff]   ;;  %2832 = vmatpush3.bf16.msra.mxu0 %v3072_v43  ;;  %v3076_v49 = vld [vmem:[%s4207_s3 + $0x10] sm:$0xff]  }
 0x1d0   :  { %v1128_v46 = vsel %vm1113_vm3, %v1074_v44, %v1076_v23  ;;  %v1215_v13 = vmax.f32 %v974_v50, %v1076_v23  ;;  %2833 = vmatprep.subr.bf16.mxu0 %v3075_v54  ;;  %v3079_v50 = vld [vmem:[%s4207_s3 + $0x48] sm:$0xff]  }
 0x1d1   :  { %v1214_v52 = vmax.f32 %v973_v61, %v1128_v46  ;;  %v1078_v42 = vpop.permute.xlu0 %1077  ;;  %2852 = vmatpush3.bf16.msra.mxu1 %v3078_v55  ;;  %v3080_v23 = vld [vmem:[%s4207_s3 + $0x8] sm:$0xff]   ;;  %v3083_v46 = vld [vmem:[%s4207_s3 + $0x40] sm:$0xff]   ;;  %v3821_v55 = vshrl.u32 %v1293_v34, 7 }
 0x1d2   :  { %v1268_v36 = vsel %vm1236_vm4, %v1215_v13, -inf  ;;  %2853 = vmatprep.subr.bf16.mxu1 %v3081_v51 }
 0x1d3   :  { %v3783_v11 = vmax.f32 %v1263_v17, %v1214_v52  ;;  %v3785_v44 = vmax.f32 %v1267_v41, %v1268_v36  ;;  %v839_v27 = vpop.permute.xlu1 %838  ;;  %v3082_v17 = vld [vmem:[%s4207_s3 + $0x98] sm:$0xff]   ;;  %2834 = vmatpush3.bf16.msra.mxu0 %v3076_v49  ;;  %v1291_v49 = vld [vmem:[%s4206_s2] sm:$0x3] }
 0x1d4   :  { %2835 = vmatprep.subr.bf16.mxu0 %v3079_v50  ;;  %v976_v54 = vmax.f32 %v3566_v5, %v839_v27 }
 0x1d5   :  { %v837_v35 = vpop.permute.xlu0 %836  ;;  %2854 = vmatpush3.bf16.msra.mxu1 %v3082_v17 }
 0x1d6   :  { %v888_v41 = vsel %vm872_vm2, %v837_v35, %v839_v27  ;;  %2855 = vmatprep.subr.bf16.mxu1 %v3085_v25  ;;  %v1295_v25 = vsub.s32 0, %v3821_v55 }
 0x1d7   :  { %v975_v19 = vmax.f32 %v3558_v63, %v888_v41  ;;  %v1080_v12 = vpop.permute.xlu1 %1079  ;;  %v3086_v63 = vld [vmem:[%s4207_s3 + $0x90] sm:$0xff]   ;;  %2836 = vmatpush3.bf16.msra.mxu0 %v3080_v23 }
 0x1d8   :  { %v1129_v47 = vsel %vm1113_vm3, %v1078_v42, %v1080_v12  ;;  %v3084_v42 = vld [vmem:[%s4207_s3] sm:$0xff]   ;;  %2837 = vmatprep.subr.bf16.mxu0 %v3083_v46 }
 0x1d9   :  { %v1216_v53 = vmax.f32 %v975_v19, %v1129_v47  ;;  %v1082_v39 = vpop.permute.xlu0 %1081  ;;  %2856 = vmatpush3.bf16.msra.mxu1 %v3086_v63  ;;  %v1217_v19 = vmax.f32 %v976_v54, %v1080_v12 }
 0x1db   :  { %v843_v61 = vpop.permute.xlu1 %842  ;;  %2838 = vmatpush3.bf16.msra.mxu0 %v3084_v42  ;;  %v1272_v12 = vsel %vm1236_vm4, %v1217_v19, -inf }
 0x1dc   :  { %v978_v36 = vmax.f32 %v3583_v22, %v843_v61  ;;  %v1299_v22 = vsub.s32 1, %v3821_v55 }
 0x1dd   :  { %v841_v13 = vpop.permute.xlu0 %840 }
 0x1de   :  { %v889_v58 = vsel %vm872_vm2, %v841_v13, %v843_v61  ;;  %v3836_v61 = vrot.slane %v1291_v49, %v1295_v25  ;;  %v3840_v46 = vrot.slane %v1291_v49, %v1299_v22 }
 0x1df   :  { %v1084_v52 = vpop.permute.xlu1 %1083  ;;  %v977_v51 = vmax.f32 %v3575_v14, %v889_v58 }
 0x1e0   :  { %v1130_v35 = vsel %vm1113_vm3, %v1082_v39, %v1084_v52  ;;  %v1219_v17 = vmax.f32 %v978_v36, %v1084_v52  ;;  %v1305_v36 = vadd.f32 %v3836_v61, %v3642_v20  ;;  %v873_v20 = vsel %vm872_vm2, %v3563_v3, %v3546_v56 }
 0x1e1   :  { %v1086_v43 = vpop.permute.xlu0 %1085  ;;  %v1218_v47 = vmax.f32 %v977_v51, %v1130_v35  ;;  %v1115_v3 = vsel %vm1113_vm3, %v3572_v10, %v3577_v16 }
 0x1e2   :  { %v1273_v14 = vsel %vm1236_vm4, %v1219_v17, -inf }
 0x1e3   :  { %v847_v41 = vpop.permute.xlu1 %846  ;;  %v1270_v13 = vmax.f32 %v1216_v53, %v1218_v47  ;;  %v1274_v58 = vmax.f32 %v1272_v12, %v1273_v14  ;;  %v1321_v53 = vmax.f32 %v1305_v36, 0.0  ;;  %v946_v47 = vmax.f32 %v3420_v0, %v3546_v56 }
 0x1e4   :  { %v980_v5 = vmax.f32 %v3598_v37, %v847_v41 }
 0x1e5   :  { %v845_v50 = vpop.permute.xlu0 %844 }
 0x1e6   :  { %v890_v27 = vsel %vm872_vm2, %v845_v50, %v847_v41  ;;  %v875_v50 = vsel %vm872_vm2, %v3590_v26, %v3585_v24  ;;  %v950_v26 = vmax.f32 %v3439_v9, %v3585_v24 }
 0x1e7   :  { %v979_v39 = vmax.f32 %v3592_v30, %v890_v27  ;;  %v1088_v63 = vpop.permute.xlu1 %1087  ;;  %v1306_v30 = vadd.f32 %v3840_v46, %v3644_v15  ;;  %v874_v15 = vsel %vm872_vm2, %v3568_v6, %v3560_v1  ;;  %v945_v6 = vmax.f32 %v3417_v62, %v873_v20 }
 0x1e8   :  { %v1131_v23 = vsel %vm1113_vm3, %v1086_v43, %v1088_v63  ;;  %v1221_v34 = vmax.f32 %v980_v5, %v1088_v63  ;;  %v947_v0 = vmax.f32 %v3424_v2, %v874_v15  ;;  %v949_v12 = vmax.f32 %v3435_v7, %v875_v50 }
 0x1e9   :  { %v1220_v52 = vmax.f32 %v979_v39, %v1131_v23  ;;  %v1090_v42 = vpop.permute.xlu0 %1089  ;;  %v1322_v25 = vmax.f32 %v1306_v30, 0.0  ;;  %v948_v39 = vmax.f32 %v3429_v4, %v3560_v1  ;;  %v1187_v23 = vmax.f32 %v946_v47, %v3551_v59 }
 0x1ea   :  { %v1275_v37 = vsel %vm1236_vm4, %v1221_v34, -inf  ;;  %v1188_v34 = vmax.f32 %v947_v0, %v1115_v3  ;;  %v1116_v4 = vsel %vm1113_vm3, %v3580_v18, %v3594_v32  ;;  %v1114_v62 = vsel %vm1113_vm3, %v3555_v60, %v3551_v59  ;;  %v4219_v3 = vld [vmem:[#allocation6_spill] sm:$0xff] }
 0x1eb   :  { %v1271_v51 = vmax.f32 %v1270_v13, %v1220_v52  ;;  %v1276_v54 = vmax.f32 %v1274_v58, %v1275_v37  ;;  %v851_v35 = vpop.permute.xlu1 %850  ;;  %v1189_v63 = vmax.f32 %v948_v39, %v3577_v16  ;;  %v1191_v2 = vmax.f32 %v950_v26, %v3594_v32 }
 0x1ec   :  { %v1186_v16 = vmax.f32 %v945_v6, %v1114_v62  ;;  %v1190_v24 = vmax.f32 %v949_v12, %v1116_v4  ;;  %v1237_v18 = vsel %vm1236_vm4, %v1187_v23, -inf  ;;  %v3167_v37 = vmov 1983009808  }
 0x1ed   :  { %v1313_v43 = vadd.f32 %v3836_v61, %v1271_v51  ;;  %v1314_v17 = vadd.f32 %v3840_v46, %v1276_v54  ;;  %v849_v41 = vpop.permute.xlu0 %848  ;;  %v1238_v7 = vsel %vm1236_vm4, %v1189_v63, -inf  ;;  %v1402_v36 = vunpack.c.l.s4 %v3167_v37 }
 0x1ee   :  { %v891_v13 = vsel %vm872_vm2, %v849_v41, %v851_v35  ;;  %v1234_v52 = vmax.f32 %v1186_v16, %v1188_v34  ;;  %v1240_v32 = vsel %vm1236_vm4, %v1191_v2, -inf  ;;  %v982_v30 = vmax.f32 %v3611_v29, %v851_v35 }
 0x1ef   :  { %v1329_v19 = vmax.f32 %v1313_v43, 0.0  ;;  %v1330_v49 = vmax.f32 %v1314_v17, 0.0  ;;  %v1092_v22 = vpop.permute.xlu1 %1091  ;;  %v1239_v43 = vmax.f32 %v1237_v18, %v1238_v7  ;;  %v4218_v17 = vld [vmem:[#allocation5_spill] sm:$0xff]  ;;  %v1403_v20 = vunpack.c.0.s8 %v1402_v36 }
 0x1f0   :  { %v981_v41 = vmax.f32 %v4218_v17, %v891_v13  ;;  %v1311_v35 = vadd.f32 %v3836_v61, %v3783_v11  ;;  %v1308_v34 = vadd.f32 %v3840_v46, %v3691_v33 }
 0x1f1   :  { %v3860_v14 = vpack.c.bf16 %v1329_v19, %v1321_v53  ;;  %v3862_v5 = vpack.c.bf16 %v1330_v49, %v1322_v25  ;;  %v1094_v27 = vpop.permute.xlu0 %1093  ;;  %v1132_v25 = vsel %vm1113_vm3, %v1090_v42, %v1092_v22  ;;  %v1223_v19 = vmax.f32 %v982_v30, %v1092_v22 }
 0x1f2   :  { %v1241_v49 = vmax.f32 %v1239_v43, %v1240_v32  ;;  %v1222_v39 = vmax.f32 %v981_v41, %v1132_v25  ;;  %v1327_v2 = vmax.f32 %v1311_v35, 0.0  ;;  %v1324_v37 = vmax.f32 %v1308_v34, 0.0 }
 0x1f3   :  { %v855_v56 = vpop.permute.xlu1 %854  ;;  %v1279_v0 = vsel %vm1236_vm4, %v1223_v19, -inf  ;;  %v3914_v33 = vsub.s32 %v1403_v20, %v3821_v55 }
 0x1f4   :  { %v984_v58 = vmax.f32 %v3625_v48, %v855_v56  ;;  %v1235_v48 = vmax.f32 %v1234_v52, %v1190_v24 }
 0x1f5   :  { %v853_v1 = vpop.permute.xlu0 %852 }
 0x1f6   :  { %v892_v10 = vsel %vm872_vm2, %v853_v1, %v855_v56  ;;  %v1303_v6 = vadd.f32 %v3836_v61, %v1235_v48  ;;  %v3168_v1 = vmov 1934713408  }
 0x1f7   :  { %v1096_v9 = vpop.permute.xlu1 %1095  ;;  %v983_v59 = vmax.f32 %v3616_v40, %v892_v10  ;;  %v1434_v62 = vunpack.c.l.s4 %v3168_v1  ;;  %v4222_v1 = vld [vmem:[#allocation7_spill] sm:$0xff] }
 0x1f8   :  { %v1133_v51 = vsel %vm1113_vm3, %v1094_v27, %v1096_v9  ;;  %v1225_v54 = vmax.f32 %v984_v58, %v1096_v9  ;;  %v1312_v27 = vadd.f32 %v3840_v46, %v3785_v44  ;;  %v1307_v44 = vadd.f32 %v3836_v61, %v3689_v28 }
 0x1f9   :  { %v1098_v60 = vpop.permute.xlu0 %1097  ;;  %v1224_v15 = vmax.f32 %v983_v59, %v1133_v51  ;;  %v1319_v24 = vmax.f32 %v1303_v6, 0.0  ;;  %v1435_v36 = vunpack.c.0.s8 %v1434_v62  ;;  %v4220_v6 = vld [vmem:[#allocation8_spill] sm:$0xff] }
 0x1fa   :  { %v1280_v47 = vsel %vm1236_vm4, %v1225_v54, -inf  ;;  %v1328_v10 = vmax.f32 %v1312_v27, 0.0  ;;  %v1323_v28 = vmax.f32 %v1307_v44, 0.0 }
 0x1fb   :  { %v859_v53 = vpop.permute.xlu1 %858  ;;  %v1277_v26 = vmax.f32 %v1222_v39, %v1224_v15  ;;  %v1281_v12 = vmax.f32 %v1279_v0, %v1280_v47  ;;  %v2708_v59 = vpack.c.bf16 %v1327_v2, %v1319_v24  ;;  %v3917_v41 = vsub.s32 %v1435_v36, %v3821_v55 }
 0x1fc   :  { %v986_v50 = vmax.f32 %v3637_v8, %v859_v53  ;;  %v1304_v8 = vadd.f32 %v3840_v46, %v1241_v49 }
 0x1fd   :  { %v857_v40 = vpop.permute.xlu0 %856 }
 0x1fe   :  { %v893_v29 = vsel %vm872_vm2, %v857_v40, %v859_v53  ;;  %v1320_v13 = vmax.f32 %v1304_v8, 0.0  ;;  %v1407_v53 = vrot.slane %v2708_v59, %v3914_v33 }
 0x1ff   :  { %v985_v42 = vmax.f32 %v4219_v3, %v893_v29  ;;  %v1100_v22 = vpop.permute.xlu1 %1099 }
 0x200   :  { %v1134_v56 = vsel %vm1113_vm3, %v1098_v60, %v1100_v22  ;;  %v1227_v63 = vmax.f32 %v986_v50, %v1100_v22  ;;  %v2709_v60 = vpack.c.bf16 %v1328_v10, %v1320_v13 }
 0x201   :  { %v1226_v23 = vmax.f32 %v985_v42, %v1134_v56  ;;  %v1102_v11 = vpop.permute.xlu0 %1101  ;;  %v4221_v56 = vld [vmem:[#allocation9_spill] sm:$0xff] }
 0x202   :  { %v1282_v4 = vsel %vm1236_vm4, %v1227_v63, -inf  ;;  %v1414_v48 = vrot.slane %v2709_v60, %v3914_v33 }
 0x203   :  { %v1278_v16 = vmax.f32 %v1277_v26, %v1226_v23  ;;  %v1283_v9 = vmax.f32 %v1281_v12, %v1282_v4  ;;  %v863_v7 = vpop.permute.xlu1 %862 }
 0x204   :  { %v988_v0 = vmax.f32 %v4220_v6, %v863_v7  ;;  %v3093_v6 = vld [vmem:[%s4207_s3 + $0x80] sm:$0xff]  }
 0x205   :  { %v1315_v58 = vadd.f32 %v3836_v61, %v1278_v16  ;;  %v1316_v18 = vadd.f32 %v3840_v46, %v1283_v9  ;;  %v861_v52 = vpop.permute.xlu0 %860 }
 0x206   :  { %v894_v3 = vsel %vm872_vm2, %v861_v52, %v863_v7 }
 0x207   :  { %v1331_v32 = vmax.f32 %v1315_v58, 0.0  ;;  %v1332_v30 = vmax.f32 %v1316_v18, 0.0  ;;  %v1104_v51 = vpop.permute.xlu1 %1103 }
 0x208   :  { %v1135_v2 = vsel %vm1113_vm3, %v1102_v11, %v1104_v51  ;;  %v1229_v10 = vmax.f32 %v988_v0, %v1104_v51 }
 0x209   :  { %v2710_v54 = vpack.c.bf16 %v1331_v32, %v1323_v28  ;;  %v2711_v43 = vpack.c.bf16 %v1332_v30, %v1324_v37  ;;  %v1106_v17 = vpop.permute.xlu0 %1105  ;;  %v1309_v30 = vadd.f32 %v3836_v61, %v3710_v31  ;;  %v1482_v31 = vrot.slane %v3862_v5, %v3914_v33 }
 0x20a   :  { %v1286_v28 = vsel %vm1236_vm4, %v1229_v10, -inf }
 0x20b   :  { %v1423_v25 = vrot.slane %v2710_v54, %v3914_v33  ;;  %v1430_v19 = vrot.slane %v2711_v43, %v3914_v33  ;;  %v867_v49 = vpop.permute.xlu1 %866 }
 0x20c   :  { %v990_v42 = vmax.f32 %v3666_v38, %v867_v49  ;;  %v987_v38 = vmax.f32 %v4222_v1, %v894_v3 }
 0x20d   :  { %v1432_v20 = vcombine.high %v1407_v53, %v1423_v25  ;;  %v1448_v15 = vcombine.high %v1414_v48, %v1430_v19  ;;  %v865_v40 = vpop.permute.xlu0 %864  ;;  %v1431_v47 = vcombine.low %v1407_v53, %v1423_v25  ;;  %v1447_v50 = vcombine.low %v1414_v48, %v1430_v19 }
 0x20e   :  { %v895_v29 = vsel %vm872_vm2, %v865_v40, %v867_v49  ;;  %v1228_v13 = vmax.f32 %v987_v38, %v1135_v2 }
 0x20f   :  { %v1108_v35 = vpop.permute.xlu1 %1107  ;;  %v1439_v55 = vrot.slane %v1431_v47, %v3917_v41  ;;  %v1455_v27 = vrot.slane %v1447_v50, %v3917_v41  ;;  %v1446_v39 = vrot.slane %v1432_v20, %v3917_v41  ;;  %v1462_v22 = vrot.slane %v1448_v15, %v3917_v41 }
 0x210   :  { %v989_v63 = vmax.f32 %v4221_v56, %v895_v29  ;;  %v1136_v23 = vsel %vm1113_vm3, %v1106_v17, %v1108_v35  ;;  %v1231_v44 = vmax.f32 %v990_v42, %v1108_v35  ;;  %v1325_v17 = vmax.f32 %v1309_v30, 0.0 }
 0x211   :  { %v869_v8 = vpop.permute.xlu0 %868  ;;  %v3932_v26 = vcombine.high %v1439_v55, %v1455_v27  ;;  %v3934_v12 = vcombine.low %v1439_v55, %v1455_v27  ;;  %v3937_v34 = vcombine.high %v1446_v39, %v1462_v22  ;;  %v3939_v4 = vcombine.low %v1446_v39, %v1462_v22  ;;  %v3089_v55 = vld [vmem:[%s4207_s3 + $0x88] sm:$0xff]   ;;  %v3091_v27 = vld [vmem:[%s4207_s3 + $0xc0] sm:$0xff]  }
 0x212   :  { %v1230_v9 = vmax.f32 %v989_v63, %v1136_v23  ;;  %v1287_v7 = vsel %vm1236_vm4, %v1231_v44, -inf  ;;  %v1475_v20 = vrot.slane %v3860_v14, %v3914_v33 }
 0x213   :  { %v871_v62 = vpop.permute.xlu1 %870  ;;  %v1288_v11 = vmax.f32 %v1286_v28, %v1287_v7  ;;  %v1544_v0 = vshrl.u32 %v3932_v26, 16  ;;  %v1550_v56 = vshrl.u32 %v3939_v4, 16  ;;  %v1556_v63 = vshrl.u32 %v3937_v34, 16 }
 0x214   :  { %v896_v16 = vsel %vm872_vm2, %v869_v8, %v871_v62  ;;  %v992_v24 = vmax.f32 %v3679_v57, %v871_v62  ;;  %v1284_v59 = vmax.f32 %v1228_v13, %v1230_v9  ;;  %v1310_v57 = vadd.f32 %v3840_v46, %v3712_v45 }
 0x215   :  { %v991_v58 = vmax.f32 %v3674_v21, %v896_v16  ;;  %v1110_v18 = vpop.permute.xlu0 %1109  ;;  %v3095_v16 = vld [vmem:[%s4207_s3 + $0x1f8] sm:$0xff]  }
 0x216   :  { %v1326_v53 = vmax.f32 %v1310_v57, 0.0  ;;  %v3090_v57 = vld [vmem:[%s4207_s3 + $0x138] sm:$0xff]  }
 0x217   :  { %v1112_v52 = vpop.permute.xlu1 %1111 }
 0x218   :  { %v1137_v37 = vsel %vm1113_vm3, %v1110_v18, %v1112_v52  ;;  %v1233_v36 = vmax.f32 %v992_v24, %v1112_v52 }
 0x219   :  { %v1232_v60 = vmax.f32 %v991_v58, %v1137_v37 }
 0x21a   :  { %v1289_v32 = vsel %vm1236_vm4, %v1233_v36, -inf }
 0x21b   :  { %v1285_v51 = vmax.f32 %v1284_v59, %v1232_v60  ;;  %v1290_v21 = vmax.f32 %v1288_v11, %v1289_v32 }
 0x21d   :  { %v1317_v54 = vadd.f32 %v3836_v61, %v1285_v51  ;;  %v1318_v43 = vadd.f32 %v3840_v46, %v1290_v21  ;;  %v3087_v61 = vld [vmem:[%s4207_s3 + $0xc8] sm:$0xff]   ;;  %v3088_v46 = vld [vmem:[%s4207_s3 + $0x178] sm:$0xff]  }
 0x21e   :  { %2857 = vmatprep.subr.bf16.mxu1 %v3087_v61  ;;  %2867 = vmatprep.subr.bf16.mxu0 %v3088_v46  ;;  %v3099_v46 = vld [vmem:[%s4207_s3 + $0x160] sm:$0xff]  }
 0x21f   :  { %v1333_v48 = vmax.f32 %v1317_v54, 0.0  ;;  %v1334_v25 = vmax.f32 %v1318_v43, 0.0  ;;  %2858 = vmatpush3.bf16.msra.mxu1 %v3089_v55  ;;  %v3092_v54 = vld [vmem:[%s4207_s3 + $0x170] sm:$0xff]  }
 0x220   :  { %2859 = vmatprep.subr.bf16.mxu1 %v3091_v27 }
 0x221   :  { %v2714_v19 = vpack.c.bf16 %v1333_v48, %v1325_v17  ;;  %v2715_v49 = vpack.c.bf16 %v1334_v25, %v1326_v53  ;;  %v3094_v48 = vld [vmem:[%s4207_s3 + $0x130] sm:$0xff]   ;;  %v3096_v25 = vld [vmem:[%s4207_s3 + $0x168] sm:$0xff]  }
 0x223   :  { %v1491_v45 = vrot.slane %v2714_v19, %v3914_v33  ;;  %v1498_v15 = vrot.slane %v2715_v49, %v3914_v33  ;;  %2860 = vmatpush3.bf16.msra.mxu1 %v3093_v6  ;;  %v3108_v6 = vld [vmem:[%s4207_s3 + $0x1e0] sm:$0xff]  }
 0x224   :  { %2889 = vmatprep.subr.bf16.mxu1 %v3095_v16  ;;  %v3119_v16 = vld [vmem:[%s4207_s3 + $0x1c8] sm:$0xff]  }
 0x225   :  { %v1500_v40 = vcombine.high %v1475_v20, %v1491_v45  ;;  %v1516_v47 = vcombine.high %v1482_v31, %v1498_v15  ;;  %v1499_v50 = vcombine.low %v1475_v20, %v1491_v45  ;;  %v1515_v29 = vcombine.low %v1482_v31, %v1498_v15  ;;  %v3097_v45 = vld [vmem:[%s4207_s3 + $0x128] sm:$0xff]   ;;  %v3098_v15 = vld [vmem:[%s4207_s3 + $0x1b8] sm:$0xff]  }
 0x227   :  { %v1507_v14 = vrot.slane %v1499_v50, %v3917_v41  ;;  %v1523_v5 = vrot.slane %v1515_v29, %v3917_v41  ;;  %v1514_v33 = vrot.slane %v1500_v40, %v3917_v41  ;;  %v1530_v35 = vrot.slane %v1516_v47, %v3917_v41  ;;  %v3100_v40 = vld [vmem:[%s4207_s3 + $0x1f0] sm:$0xff]  }
 0x228   :  { %v1538_v41 = vshrl.u32 %v3934_v12, 16 }
 0x229   :  { %v1532_v39 = vcombine.high %v1507_v14, %v1523_v5  ;;  %v1531_v3 = vcombine.low %v1507_v14, %v1523_v5  ;;  %v1534_v42 = vcombine.high %v1514_v33, %v1530_v35  ;;  %v1533_v22 = vcombine.low %v1514_v33, %v1530_v35  ;;  %v3101_v14 = vld [vmem:[%s4207_s3 + $0x120] sm:$0xff]   ;;  %v3102_v5 = vld [vmem:[%s4207_s3 + $0x1b0] sm:$0xff]   ;;  %v3103_v33 = vld [vmem:[%s4207_s3 + $0x158] sm:$0xff]  }
 0x22a   :  { %v3104_v35 = vld [vmem:[%s4207_s3 + $0x1e8] sm:$0xff]  }
 0x22b   :  { %v1543_v8 = vpack.i.b16 %v1532_v39, %v3932_v26  ;;  %v1545_v23 = vshrl.u32 %v1532_v39, 16  ;;  %v1539_v44 = vshrl.u32 %v1531_v3, 16  ;;  %v1555_v1 = vpack.i.b16 %v1534_v42, %v3937_v34  ;;  %v3105_v39 = vld [vmem:[%s4207_s3 + $0x118] sm:$0xff]  }
 0x22c   :  { %v1551_v38 = vshrl.u32 %v1533_v22, 16  ;;  %v1557_v62 = vshrl.u32 %v1534_v42, 16  ;;  %v1537_v2 = vpack.i.b16 %v1531_v3, %v3934_v12  ;;  %v3989_v10 = vpack.i.b16 %v1533_v22, %v3939_v4  ;;  %v3106_v3 = vld [vmem:[%s4207_s3 + $0x1a8] sm:$0xff]   ;;  %v3107_v22 = vld [vmem:[%s4207_s3 + $0x150] sm:$0xff]  }
 0x22d   :  { %v2720_v9 = vcombine.low %v1543_v8, %v1543_v8  ;;  %v1540_v7 = vpack.i.b16 %v1539_v44, %v1538_v41  ;;  %v1546_v24 = vpack.i.b16 %v1545_v23, %v1544_v0  ;;  %v2721_v4 = vcombine.high %v1543_v8, %v1543_v8  ;;  %v3109_v41 = vld [vmem:[%s4207_s3 + $0x110] sm:$0xff]   ;;  %v3112_v8 = vld [vmem:[%s4207_s3 + $0x1d8] sm:$0xff]   ;;  %v3113_v23 = vld [vmem:[%s4207_s3 + $0x108] sm:$0xff]  }
 0x22e   :  { %v1552_v26 = vpack.i.b16 %v1551_v38, %v1550_v56  ;;  %v1558_v13 = vpack.i.b16 %v1557_v62, %v1556_v63  ;;  %v2729_v52 = vcombine.high %v1555_v1, %v1555_v1  ;;  %v2728_v28 = vcombine.low %v1555_v1, %v1555_v1  ;;  %v3110_v56 = vld [vmem:[%s4207_s3 + $0x1a0] sm:$0xff]   ;;  %v3111_v63 = vld [vmem:[%s4207_s3 + $0x148] sm:$0xff]   ;;  %v3114_v44 = vld [vmem:[%s4207_s3 + $0x198] sm:$0xff]  }
 0x22f   :  { %1578 = vrot.lane.b32.xlu1 %v2720_v9, %s3166_s28  ;;  %v2718_v34 = vcombine.low %v1540_v7, %v1540_v7  ;;  %v2719_v12 = vcombine.high %v1540_v7, %v1540_v7  ;;  %v2723_v58 = vcombine.high %v1546_v24, %v1546_v24  ;;  %v2722_v18 = vcombine.low %v1546_v24, %v1546_v24  ;;  %v3115_v1 = vld [vmem:[%s4207_s3 + $0x140] sm:$0xff]   ;;  %v3116_v38 = vld [vmem:[%s4207_s3 + $0x1d0] sm:$0xff]   ;;  %v3120_v9 = vld [vmem:[%s4207_s3 + $0x278] sm:$0xff]  }
 0x230   :  { %v2727_v37 = vcombine.high %v1552_v26, %v1552_v26  ;;  %v2726_v36 = vcombine.low %v1552_v26, %v1552_v26  ;;  %v2731_v59 = vcombine.high %v1558_v13, %v1558_v13  ;;  %v2730_v11 = vcombine.low %v1558_v13, %v1558_v13  ;;  %v3117_v62 = vld [vmem:[%s4207_s3 + $0x100] sm:$0xff]   ;;  %v3121_v7 = vld [vmem:[%s4207_s3 + $0x188] sm:$0xff]   ;;  %v3122_v24 = vld [vmem:[%s4207_s3 + $0x238] sm:$0xff]  }
 0x231   :  { %1568 = vrot.lane.b32.xlu0 %v2718_v34, %s3169_s0  ;;  %v2717_v32 = vcombine.high %v1537_v2, %v1537_v2  ;;  %v2716_v51 = vcombine.low %v1537_v2, %v1537_v2  ;;  %v2724_v17 = vcombine.low %v3989_v10, %v3989_v10  ;;  %v3118_v2 = vld [vmem:[%s4207_s3 + $0x190] sm:$0xff]   ;;  %v3123_v13 = vld [vmem:[%s4207_s3 + $0x1c0] sm:$0xff]  }
 0x233   :  { %1570 = vrot.lane.b32.xlu1 %v2719_v12, %s3169_s0  ;;  %v3124_v12 = vld [vmem:[%s4207_s3 + $0x270] sm:$0xff]  }
 0x235   :  { %1580 = vrot.lane.b32.xlu0 %v2721_v4, %s3166_s28 }
 0x237   :  { %1590 = vrot.lane.b32.xlu1 %v2723_v58, %s3165_s27 }
 0x239   :  { %1588 = vrot.lane.b32.xlu0 %v2722_v18, %s3165_s27  ;;  %v3125_v18 = vld [vmem:[%s4207_s3 + $0x180] sm:$0xff]  }
 0x23b   :  { %1615 = vrot.lane.b32.xlu1 %v2729_v52, %s3166_s28  ;;  %v3126_v52 = vld [vmem:[%s4207_s3 + $0x230] sm:$0xff]  }
 0x23d   :  { %1613 = vrot.lane.b32.xlu0 %v2728_v28, %s3166_s28  ;;  %v3127_v28 = vld [vmem:[%s4207_s3 + $0x268] sm:$0xff]  }
 0x23f   :  { %1606 = vrot.lane.b32.xlu1 %v2727_v37, %s3169_s0  ;;  %v2725_v37 = vcombine.high %v3989_v10, %v3989_v10  ;;  %v3131_v10 = vld [vmem:[%s4207_s3 + $0x258] sm:$0xff]  }
 0x241   :  { %1604 = vrot.lane.b32.xlu0 %v2726_v36, %s3169_s0  ;;  %v3128_v36 = vld [vmem:[%s4207_s3 + $0x228] sm:$0xff]  }
 0x243   :  { %1624 = vrot.lane.b32.xlu1 %v2731_v59, %s3165_s27  ;;  %v3129_v59 = vld [vmem:[%s4207_s3 + $0x260] sm:$0xff]  }
 0x245   :  { %1622 = vrot.lane.b32.xlu0 %v2730_v11, %s3165_s27 }
 0x2a1   :  { %v1579_v60 = vpop.permute.xlu1 %1578 }
 0x2a3   :  { %v1569_v30 = vpop.permute.xlu0 %1568 }
 0x2a4   :  { %v1630_v21 = vsel %vm1236_vm4, %v2717_v32, %v1569_v30  ;;  %v3132_v32 = vld [vmem:[%s4207_s3 + $0x218] sm:$0xff]  }
 0x2a5   :  { %v1571_v43 = vpop.permute.xlu1 %1570  ;;  %2331 = vmatprep.mubr.bf16.mxu0 %v1630_v21  ;;  %v3136_v21 = vld [vmem:[%s4207_s3 + $0x208] sm:$0xff]  }
 0x2a6   :  { %2332 = vmatmul.mubr.bf16.vlgmr.msra.gmra.mxu0 %v2716_v51  ;;  %v1573_v49 = vsel %vm1236_vm4, %v1569_v30, %v1571_v43  ;;  %v3133_v30 = vld [vmem:[%s4207_s3 + $0x250] sm:$0xff]   ;;  %v3135_v51 = vld [vmem:[%s4207_s3 + $0x248] sm:$0xff]   ;;  %v3138_v43 = vld [vmem:[%s4207_s3 + $0x200] sm:$0xff]  }
 0x2a7   :  { %2868 = vmatpush3.bf16.msra.mxu0 %v3090_v57  ;;  %v1581_v53 = vpop.permute.xlu0 %1580  ;;  %2411 = vmatprep.mubr.bf16.mxu0 %v2724_v17  ;;  %v1634_v47 = vsel %vm1113_vm3, %v1573_v49, %v1579_v60  ;;  %v3134_v57 = vld [vmem:[%s4207_s3 + $0x210] sm:$0xff]   ;;  %v2505_v49 = vld [vmem:[%s4209_s5 + $0x28] sm:$0xff] }
 0x2a8   :  { %2869 = vmatprep.subr.bf16.mxu0 %v3092_v54  ;;  %v1583_v20 = vsel %vm1113_vm3, %v1579_v60, %v1581_v53  ;;  %v3130_v60 = vld [vmem:[%s4207_s3 + $0x220] sm:$0xff]  }
 0x2a9   :  { %v4017_v19 = vpop.permute.xlu1 %1590  ;;  %v3137_v54 = vld [vmem:[%s4207_s3 + $0x240] sm:$0xff]  }
 0x2ab   :  { %2870 = vmatpush3.bf16.msra.mxu0 %v3094_v48  ;;  %v4021_v31 = vpop.permute.xlu0 %1588  ;;  %v2507_v48 = vld [vmem:[%s4209_s5 + $0x38] sm:$0xff] }
 0x2ac   :  { %v1638_v61 = vsel %vm872_vm2, %v1583_v20, %v4021_v31  ;;  %2871 = vmatprep.subr.bf16.mxu0 %v3096_v25  ;;  %v1593_v34 = vsel %vm872_vm2, %v4021_v31, %v4017_v19  ;;  %v3170_v25 = vmov 0.0   ;;  %v2506_v19 = vld [vmem:[%s4209_s5 + $0x30] sm:$0xff]  ;;  %v2504_v20 = vld [vmem:[%s4209_s5 + $0x20] sm:$0xff]  ;;  %v2503_v31 = vld [vmem:[%s4209_s5 + $0x18] sm:$0xff] }
 0x2ad   :  { %v4038_v50 = vpop.permute.xlu1 %1615  ;;  %2371 = vmatprep.mubr.bf16.mxu1 %v1638_v61  ;;  %v2500_v61 = vld [vmem:[%s4209_s5] sm:$0xff] }
 0x2ae   :  { %2372 = vmatmul.mubr.bf16.vlgmr.msra.gmra.mxu1 %v1634_v47 }
 0x2af   :  { %2872 = vmatpush3.bf16.msra.mxu0 %v3097_v45  ;;  %2890 = vmatpush3.bf16.msra.mxu1 %v3098_v15  ;;  %v4040_v29 = vpop.permute.xlu0 %1613  ;;  %v2502_v45 = vld [vmem:[%s4209_s5 + $0x10] sm:$0xff]  ;;  %v2501_v15 = vld [vmem:[%s4209_s5 + $0x8] sm:$0xff] }
 0x2b0   :  { %2873 = vmatprep.subr.bf16.mxu0 %v3099_v46  ;;  %2891 = vmatprep.subr.bf16.mxu1 %v3100_v40  ;;  %v1617_v17 = vsel %vm1113_vm3, %v4040_v29, %v4038_v50 }
 0x2b1   :  { %v1607_v55 = vpop.permute.xlu1 %1606 }
 0x2b3   :  { %2874 = vmatpush3.bf16.msra.mxu0 %v3101_v14  ;;  %2892 = vmatpush3.bf16.msra.mxu1 %v3102_v5  ;;  %v1605_v27 = vpop.permute.xlu0 %1604 }
 0x2b4   :  { %v1608_v42 = vsel %vm1236_vm4, %v1605_v27, %v1607_v55  ;;  %2875 = vmatprep.subr.bf16.mxu0 %v3103_v33  ;;  %2893 = vmatprep.subr.bf16.mxu1 %v3104_v35  ;;  %v1642_v11 = vsel %vm1236_vm4, %v2725_v37, %v1605_v27 }
 0x2b5   :  { %v1646_v0 = vsel %vm1113_vm3, %v1608_v42, %v4040_v29  ;;  %v1625_v4 = vpop.permute.xlu1 %1624 }
 0x2b6   :  { %2451 = vmatprep.mubr.bf16.mxu1 %v1646_v0 }
 0x2b7   :  { %2876 = vmatpush3.bf16.msra.mxu0 %v3105_v39  ;;  %2894 = vmatpush3.bf16.msra.mxu1 %v3106_v3  ;;  %v1623_v26 = vpop.permute.xlu0 %1622 }
 0x2b8   :  { %2877 = vmatprep.subr.bf16.mxu0 %v3107_v22  ;;  %2895 = vmatprep.subr.bf16.mxu1 %v3108_v6  ;;  %v1626_v58 = vsel %vm872_vm2, %v1623_v26, %v1625_v4  ;;  %v1650_v53 = vsel %vm872_vm2, %v1617_v17, %v1623_v26 }
 0x2bb   :  { %2878 = vmatpush3.bf16.msra.mxu0 %v3109_v41  ;;  %2896 = vmatpush3.bf16.msra.mxu1 %v3110_v56  ;;  %v2732_v41 = vld [vmem:[%s4208_s4] ss:$0 sm:$0xff]  ;;  %s3172_s4 = smov [#allocation2]  }
 0x2bc   :  { %2879 = vmatprep.subr.bf16.mxu0 %v3111_v63  ;;  %2897 = vmatprep.subr.bf16.mxu1 %v3112_v8  ;;  %s2606_s1 = sshll.u32 %s3172_s4, 4  ;;  %s2607_s1 = int_to_ptr.vmem [resolvable:$true] %s2606_s1 }
 0x2bd   :  { %p3148_p1 = scmp.lt.s32.totalorder %s2607_s1, %s2607_s1 }
 0x2bf   :  { %2880 = vmatpush3.bf16.msra.mxu0 %v3113_v23  ;;  %2898 = vmatpush3.bf16.msra.mxu1 %v3114_v44 }
 0x2c0   :  { %2881 = vmatprep.subr.bf16.mxu0 %v3115_v1  ;;  %2899 = vmatprep.subr.bf16.mxu1 %v3116_v38 }
 0x2c3   :  { %2882 = vmatpush3.bf16.msra.mxu0 %v3117_v62  ;;  %2900 = vmatpush3.bf16.msra.mxu1 %v3118_v2 }
 0x2c4   :  { %2901 = vmatprep.subr.bf16.mxu1 %v3119_v16  ;;  %2911 = vmatprep.subr.bf16.mxu0 %v3120_v9 }
 0x2c6   :  { %2412 = vmatmul.mubr.bf16.vlgmr.msra.gmra.mxu0 %v1593_v34 }
 0x2c7   :  { %2902 = vmatpush3.bf16.msra.mxu1 %v3121_v7  ;;  %2912 = vmatpush3.bf16.msra.mxu0 %v3122_v24 }
 0x2c8   :  { %2491 = vmatprep.mubr.bf16.mxu0 %v1626_v58  ;;  %2903 = vmatprep.subr.bf16.mxu1 %v3123_v13  ;;  %v2813_v13 = vld [vmem:[%s4210_s6] ss:$0 sm:$0xff]  ;;  %s3143_s6 = scalar_lea.vmem %s2607_s1, 128 }
 0x2c9   :  { %2913 = vmatprep.subr.bf16.mxu0 %v3124_v12  ;;  %p3144_p0 = scmp.ne.s32.totalorder %s2607_s1, %s3143_s6  ;;  %p3149_p2 = scmp.lt.s32.totalorder %s3143_s6, %s3143_s6 }
 0x2cb   :  { %2904 = vmatpush3.bf16.msra.mxu1 %v3125_v18  ;;  %2914 = vmatpush3.bf16.msra.mxu0 %v3126_v52  ;;  %p3150_p3 = por %p3149_p2, %p3148_p1 }
 0x2cc   :  { %2915 = vmatprep.subr.bf16.mxu0 %v3127_v28  ;;  %2942 = vmatprep.subr.mxu1 %v3170_v25 }
 0x2cd   :  { %p3151_p4 = pnand %p3150_p3, %p3144_p0 }
 0x2ce   :  { %2452 = vmatmul.mubr.bf16.vlgmr.msra.gmra.mxu1 %v1642_v11 }
 0x2cf   :  { %2916 = vmatpush3.bf16.msra.mxu0 %v3128_v36  ;;  %2943 = vmatpush3.msra.mxu1 %v2507_v48 }
 0x2d0   :  { %2917 = vmatprep.subr.bf16.mxu0 %v3129_v59  ;;  %2944 = vmatprep.subr.mxu1 %v3170_v25 }
 0x2d1   :  { %2945 = vmatpush3.msra.mxu1 %v2506_v19  ;;  %2958 = vmatprep.mubr.msk.f32.mxu1 %vm3171_vm5, %v3170_v25 }
 0x2d2   :  { %2946 = vmatprep.subr.mxu1 %v3170_v25 }
 0x2d3   :  { %2918 = vmatpush3.bf16.msra.mxu0 %v3130_v60  ;;  %2947 = vmatpush3.msra.mxu1 %v2505_v49 }
 0x2d4   :  { %2919 = vmatprep.subr.bf16.mxu0 %v3131_v10  ;;  %2948 = vmatprep.subr.mxu1 %v3170_v25 }
 0x2d5   :  { %2949 = vmatpush3.msra.mxu1 %v2504_v20 }
 0x2d6   :  { %2950 = vmatprep.subr.mxu1 %v3170_v25 }
 0x2d7   :  { %2920 = vmatpush3.bf16.msra.mxu0 %v3132_v32  ;;  %2951 = vmatpush3.msra.mxu1 %v2503_v31 }
 0x2d8   :  { %2921 = vmatprep.subr.bf16.mxu0 %v3133_v30  ;;  %2952 = vmatprep.subr.mxu1 %v3170_v25 }
 0x2d9   :  { %2953 = vmatpush3.msra.mxu1 %v2502_v45 }
 0x2da   :  { %2954 = vmatprep.subr.mxu1 %v3170_v25 }
 0x2db   :  { %2922 = vmatpush3.bf16.msra.mxu0 %v3134_v57  ;;  %2955 = vmatpush3.msra.mxu1 %v2501_v15 }
 0x2dc   :  { %2923 = vmatprep.subr.bf16.mxu0 %v3135_v51  ;;  %2956 = vmatprep.subr.mxu1 %v3170_v25 }
 0x2dd   :  { %2957 = vmatpush3.msra.mxu1 %v2500_v61 }
 0x2df   :  { %2924 = vmatpush3.bf16.msra.mxu0 %v3136_v21 }
 0x2e0   :  { %2925 = vmatprep.subr.bf16.mxu0 %v3137_v54 }
 0x2e3   :  { %2926 = vmatpush3.bf16.msra.mxu0 %v3138_v43 }
 0x2e6   :  { %2492 = vmatmul.mubr.bf16.vlgmr.msra.gmra.mxu0 %v1650_v53 }
 0x366   :  { %v2839_v46 = vpop.f32.mrf.mxu0 }
 0x368   :  { %v2840_v40 = vpop.f32.mrf.mxu0 }
 0x369   :  { %v2841_v0 = vadd.f32 %v2840_v40, %v2839_v46 }
 0x36a   :  { %v2842_v47 = vpop.f32.mrf.mxu0 }
 0x36b   :  { %v2334_v63 = vadd.f32 %v2841_v0, %v2732_v41 }
 0x36c   :  { %v2843_v50 = vpop.f32.mrf.mxu0 }
 0x36e   :  { %v2861_v29 = vpop.f32.mrf.mxu1 }
 0x370   :  { %v2862_v14 = vpop.f32.mrf.mxu1 }
 0x371   :  { %v2863_v56 = vadd.f32 %v2862_v14, %v2861_v29 }
 0x372   :  { %v2864_v5 = vpop.f32.mrf.mxu1 }
 0x373   :  { %v2374_v23 = vadd.f32 %v2863_v56, %v2334_v63 }
 0x374   :  { %v2865_v33 = vpop.f32.mrf.mxu1 }
 0x386   :  { %v2883_v35 = vpop.f32.mrf.mxu0 }
 0x388   :  { %v2884_v55 = vpop.f32.mrf.mxu0 }
 0x389   :  { %v2885_v8 = vadd.f32 %v2884_v55, %v2883_v35 }
 0x38a   :  { %v2886_v27 = vpop.f32.mrf.mxu0 }
 0x38b   :  { %v2414_v38 = vadd.f32 %v2885_v8, %v2374_v23 }
 0x38c   :  { %v2887_v39 = vpop.f32.mrf.mxu0 }
 0x38e   :  { %v2905_v3 = vpop.f32.mrf.mxu1 }
 0x390   :  { %v2906_v42 = vpop.f32.mrf.mxu1 }
 0x391   :  { %v2907_v44 = vadd.f32 %v2906_v42, %v2905_v3 }
 0x392   :  { %v2908_v22 = vpop.f32.mrf.mxu1 }
 0x393   :  { %v2454_v2 = vadd.f32 %v2907_v44, %v2414_v38 }
 0x394   :  { %v2909_v6 = vpop.f32.mrf.mxu1 }
 0x3a6   :  { %v2927_v1 = vpop.f32.mrf.mxu0 }
 0x3a8   :  { %v2928_v62 = vpop.f32.mrf.mxu0 }
 0x3a9   :  { %v2929_v16 = vadd.f32 %v2928_v62, %v2927_v1 }
 0x3aa   :  { %v2930_v9 = vpop.f32.mrf.mxu0 }
 0x3ab   :  { %v2494_v7 = vadd.f32 %v2929_v16, %v2454_v2 }
 0x3ac   :  { %v2931_v24 = vpop.f32.mrf.mxu0 }
 0x3ad   :  { %v2499_v26 = vmax.f32 %v2494_v7, 0.0 }
 0x3af   :  { %2959 = vmatmul.mubr.msk.f32.vlgmr.msra.gmra.mxu1 %vm1113_vm3, %v2499_v26 }
 0x46f   :  { %v2584_v34 = vpop.f32.mrf.mxu1 }
 0x470   :  { %v2585_v12 = vadd.f32 %v2813_v13, %v2584_v34 }
 0x471   :  { %v2960_v4 = vpop.f32.mrf.mxu1 }
 0x472   :  { %2588 = vmax.xlane.f32.xlu0 %v2585_v12 }
 0x4fb   :  { %v2589_v58 = vpop.xlane.xlu0 %2588 }
 0x4fc   :  { %v2590_v18 = vsub.f32 %v2585_v12, %v2589_v58 }
 0x4fe   :  { %v2591_v52 = vmul.f32 1.442695, %v2590_v18 }
 0x500   :  { %3139 = vpow2.f32 %v2591_v52 }
 0x50d   :  { %v3140_v28 = vpop.eup %3139 }
 0x50e   :  { %2593 = vadd.xlane.f32.xlu1 %v3140_v28 }
 0x597   :  { %v2594_v37 = vpop.xlane.xlu1 %2593 }
 0x598   :  { %3141 = vlog2.f32 %v2594_v37 }
 0x5a5   :  { %v3142_v36 = vpop.eup %3141 }
 0x5a6   :  { %v2596_v59 = vmul.f32 0.6931472, %v3142_v36 }
 0x5a8   :  { %v2597_v11 = vadd.f32 %v2596_v59, %v2589_v58 }
 0x5aa   :  { %v2598_v60 = vsub.f32 %v2585_v12, %v2597_v11 }
 0x5ac   :  { %2599 = vst [vmem:[#allocation2] sm:$0xff] %v2598_v60 }
 0x5ad   :  { %3154 = shalt.err (!%p3151_p4)
}
 0x5ae   :  { %2609 = dma.vmem_to_hbm [thread:$0]  %s2607_s1, 128, %s4211_s7, [#allocation3]  }
 0x5af   :  { %3163 = dma.done.wait [#allocation3], 128  }
 0x5b0   :  { %3164 = vsyncadd [#allocation3], 4294967168 }
 0x5b1   :  { %2613 = vsyncpa [#allocation3], 1 }

</bundles_post_ra>
